<compile_context>
chip_gen: v7x
topology: tpu7x:2x2x1
jax: 0.10.0
libtpu: 0.0.40
codegen_flags: <defaults>
</compile_context>

<pallas_src>
import functools
import math

import jax
import jax.numpy as jnp
import numpy as np
from jax.experimental import pallas as pl
from jax.experimental.pallas import tpu as pltpu


# ----------------------------------------------------------------------------
# Fused Pallas kernel: entire Motion_GCN forward for the whole batch.
#
#   x_ref     : (N, B*Fp)        input slab; slab[n, b*Fp+f] = x[b, n, f] (zero-padded)
#   w_ref     : (L, B*Fp, B*Fp)  block-diagonal per-layer weights (kron(I_B, W_pad))
#   att_ref   : (L, N, N)        per-layer graph attention matrices
#   scale_ref : (L, N, B*Fp)     folded eval-BN scale (ones for gc7)
#   shift_ref : (L, N, B*Fp)     folded eval-BN shift + GC bias (gc7: bias only)
#   out_ref   : (N, B*Fp)
# ----------------------------------------------------------------------------
def _motion_gcn_fused_kernel(x_ref, w_ref, att_ref, scale_ref, shift_ref,
                             out_ref, *, num_stage):
    x = x_ref[...].astype(jnp.float32)

    def gc(l, y):
        # One MXU matmul per step: the block-diagonal W handles the whole batch.
        support = jnp.dot(y, w_ref[l], preferred_element_type=jnp.float32)
        z = jnp.dot(att_ref[l], support, preferred_element_type=jnp.float32)
        return z * scale_ref[l] + shift_ref[l]

    # gc1 -> bn1 -> tanh  (dropout = identity in eval mode)
    y = jnp.tanh(gc(0, x))
    l = 1
    # Residual GC blocks (statically unrolled; num_stage is small).
    # TODO(synk): switch to lax.fori_loop over the stacked layer axis if num_stage grows.
    for _ in range(num_stage):
        y_in = y
        y = jnp.tanh(gc(l, y))
        l += 1
        y = jnp.tanh(gc(l, y)) + y_in
        l += 1
    # gc7: plain graph conv (bias only, no BN / tanh) + residual with the input
    out_ref[...] = (gc(l, y) + x).astype(out_ref.dtype)


# ----------------------------------------------------------------------------
# Parameter construction (deterministic, mirrors the PyTorch __init__ shapes)
# ----------------------------------------------------------------------------
def _uniform(key, shape, stdv):
    return jax.random.uniform(key, shape, jnp.float32, minval=-stdv, maxval=stdv)


def init_graph_conv(key, in_f, out_f, node_n):
    stdv = 1.0 / math.sqrt(out_f)
    k1, k2, k3 = jax.random.split(key, 3)
    return {
        "w": _uniform(k1, (in_f, out_f), stdv),
        "att": _uniform(k2, (node_n, node_n), stdv),
        "b": _uniform(k3, (out_f,), stdv),
    }


def init_bn(node_n, feat):
    n = node_n * feat
    return {
        "gamma": jnp.ones((n,), jnp.float32),
        "beta": jnp.zeros((n,), jnp.float32),
        "running_mean": jnp.zeros((n,), jnp.float32),
        "running_var": jnp.ones((n,), jnp.float32),
    }


def bn_fold(bn, node_n, feat, eps=1e-5):
    """Fold eval-mode BatchNorm1d into per-(node, feature) scale / shift."""
    scale = bn["gamma"] / jnp.sqrt(bn["running_var"] + eps)
    shift = bn["beta"] - bn["running_mean"] * scale
    return scale.reshape(node_n, feat), shift.reshape(node_n, feat)


def init_motion_gcn(key, input_feature, hidden_feature, num_stage, node_n):
    keys = jax.random.split(key, 2 + 2 * num_stage)
    params = {
        "gc1": init_graph_conv(keys[0], input_feature, hidden_feature, node_n),
        "bn1": init_bn(node_n, hidden_feature),
        "gc7": init_graph_conv(keys[1], hidden_feature, input_feature, node_n),
        "blocks": [],
    }
    for i in range(num_stage):
        blk = {
            "gc1": init_graph_conv(keys[2 + 2 * i], hidden_feature,
                                   hidden_feature, node_n),
            "bn1": init_bn(node_n, hidden_feature),
            "gc2": init_graph_conv(keys[3 + 2 * i], hidden_feature,
                                   hidden_feature, node_n),
            "bn2": init_bn(node_n, hidden_feature),
        }
        params["blocks"].append(blk)
    return params


# ----------------------------------------------------------------------------
# One-time host-side packing of parameters into 4 stacked kernel operands.
# ----------------------------------------------------------------------------
def prepare_motion_gcn_inputs(params, *, batch, node_n, input_feature,
                              hidden_feature):
    B = batch
    Fp = max(input_feature, hidden_feature)

    def bdiag(w_pad):            # (Fp, Fp) -> (B*Fp, B*Fp) block-diagonal
        return jnp.kron(jnp.eye(B, dtype=w_pad.dtype), w_pad)

    def tile_lanes(a):           # (N, Fp) -> (N, B*Fp); slab column order (b, f)
        return jnp.tile(a, (1, B))

    def pad_w(w):                # (fin, fout) -> (Fp, Fp), zero padded
        fin, fout = w.shape
        return jnp.pad(w, ((0, Fp - fin), (0, Fp - fout)))

    def pad_f(a):                # (..., f) -> (..., Fp), zero padded
        return jnp.pad(a, [(0, 0)] * (a.ndim - 1) + [(0, Fp - a.shape[-1])])

    ws, atts, scales, shifts = [], [], [], []

    def add_bn_layer(gc, bn, feat):
        s, t = bn_fold(bn, node_n, feat)                  # (N, feat)
        # (att@(xW) + b) * s + t  ==  att@(xW) * s + (t + b*s)
        shift = t + gc["b"][None, :] * s
        ws.append(bdiag(pad_w(gc["w"])))
        atts.append(gc["att"])
        scales.append(tile_lanes(pad_f(s)))
        shifts.append(tile_lanes(pad_f(shift)))

    add_bn_layer(params["gc1"], params["bn1"], hidden_feature)
    for blk in params["blocks"]:
        add_bn_layer(blk["gc1"], blk["bn1"], hidden_feature)
        add_bn_layer(blk["gc2"], blk["bn2"], hidden_feature)

    # gc7: plain graph conv -> scale = 1, shift = bias (padded / tiled)
    gc7 = params["gc7"]
    ws.append(bdiag(pad_w(gc7["w"])))
    atts.append(gc7["att"])
    scales.append(jnp.ones((node_n, B * Fp), jnp.float32))
    shifts.append(tile_lanes(
        jnp.broadcast_to(pad_f(gc7["b"])[None, :], (node_n, Fp))))

    return {
        "w": jnp.stack(ws),          # (L, B*Fp, B*Fp)
        "att": jnp.stack(atts),      # (L, N, N)
        "scale": jnp.stack(scales),  # (L, N, B*Fp)
        "shift": jnp.stack(shifts),  # (L, N, B*Fp)
    }


# ----------------------------------------------------------------------------
# Motion_GCN forward: single fused pallas_call (no grid, everything in VMEM)
# ----------------------------------------------------------------------------
def motion_gcn_forward(stacks, x, *, node_n, input_feature, hidden_feature,
                       num_stage):
    B, N, Fin = x.shape
    assert N == node_n and Fin == input_feature
    Fp = max(input_feature, hidden_feature)

    # (B, N, Fin) -> lane-dense padded slab (N, B*Fp); slab[n, b*Fp+f] = x[b,n,f]
    # TODO(synk): callers that can produce / consume slab layout directly would
    #             save these two tiny transpose fusions around the kernel.
    x_pad = jnp.pad(x, ((0, 0), (0, 0), (0, Fp - Fin)))
    x_slab = jnp.transpose(x_pad, (1, 0, 2)).reshape(N, B * Fp)

    kernel = functools.partial(_motion_gcn_fused_kernel, num_stage=num_stage)
    vmem = pl.BlockSpec(memory_space=pltpu.MemorySpace.VMEM)

    out_slab = pl.pallas_call(
        kernel,
        out_shape=jax.ShapeDtypeStruct((N, B * Fp), x.dtype),
        in_specs=[vmem] * 5,
        out_specs=vmem,
        compiler_params=pltpu.CompilerParams(
            vmem_limit_bytes=32 * 1024 * 1024),
    )(x_slab, stacks["w"], stacks["att"], stacks["scale"], stacks["shift"])

    # slab (N, B*Fp) -> (B, N, Fin)
    return out_slab.reshape(N, B, Fp).transpose(1, 0, 2)[:, :, :Fin]


# ----------------------------------------------------------------------------
# Pure-JAX reference (same eval-mode semantics) for correctness checking
# ----------------------------------------------------------------------------
def _ref_gc(gc, x):
    hp = jax.lax.Precision.HIGHEST
    return jnp.matmul(gc["att"], jnp.matmul(x, gc["w"], precision=hp),
                      precision=hp) + gc["b"]


def motion_gcn_reference(params, x, *, node_n, hidden_feature, input_feature):
    s, t = bn_fold(params["bn1"], node_n, hidden_feature)
    y = jnp.tanh(_ref_gc(params["gc1"], x) * s + t)
    for blk in params["blocks"]:
        y_in = y
        s1, t1 = bn_fold(blk["bn1"], node_n, hidden_feature)
        y = jnp.tanh(_ref_gc(blk["gc1"], y) * s1 + t1)
        s2, t2 = bn_fold(blk["bn2"], node_n, hidden_feature)
        y = jnp.tanh(_ref_gc(blk["gc2"], y) * s2 + t2) + y_in
    return _ref_gc(params["gc7"], y) + x


# ----------------------------------------------------------------------------
if __name__ == "__main__":
    batch = 4            # B * Fp = 128 lanes -> full vreg / MXU column occupancy
    node_n = 48
    input_feature = 16
    hidden_feature = 32
    num_stage = 2
    p_dropout = 0.5      # unused in eval-mode forward

    key = jax.random.PRNGKey(0)
    kx, kp = jax.random.split(key)
    x = jax.random.normal(kx, (batch, node_n, input_feature), jnp.float32)
    params = init_motion_gcn(kp, input_feature, hidden_feature, num_stage,
                             node_n)

    # One-time parameter packing (block-diag weights, folded BN, lane tiling).
    stacks = prepare_motion_gcn_inputs(
        params, batch=batch, node_n=node_n,
        input_feature=input_feature, hidden_feature=hidden_feature)

    fwd = jax.jit(functools.partial(
        motion_gcn_forward, node_n=node_n, input_feature=input_feature,
        hidden_feature=hidden_feature, num_stage=num_stage))
    out = jax.block_until_ready(fwd(stacks, x))

    ref = motion_gcn_reference(params, x, node_n=node_n,
                               hidden_feature=hidden_feature,
                               input_feature=input_feature)
    np.testing.assert_allclose(np.asarray(out), np.asarray(ref),
                               rtol=1e-4, atol=1e-4)
    print("KERNEL_OK")
</pallas_src>

<mosaic_0001>
module attributes {stable_mosaic.version = 11 : i64} {
  func.func @_motion_gcn_fused_kernel(%arg0: memref<48x128xf32, #tpu.memory_space<vmem>>, %arg1: memref<6x128x128xf32, #tpu.memory_space<vmem>>, %arg2: memref<6x48x48xf32, #tpu.memory_space<vmem>>, %arg3: memref<6x48x128xf32, #tpu.memory_space<vmem>>, %arg4: memref<6x48x128xf32, #tpu.memory_space<vmem>>, %arg5: memref<48x128xf32, #tpu.memory_space<vmem>>) attributes {dimension_semantics = [], scalar_prefetch = 0 : i64, scratch_operands = 0 : i64, tpu.core_type = #tpu.core_type<tc>} {
    %c0 = arith.constant 0 : index
    %c0_0 = arith.constant 0 : index
    %0 = vector.load %arg0[%c0, %c0_0] : memref<48x128xf32, #tpu.memory_space<vmem>>, vector<48x128xf32>
    %c0_1 = arith.constant 0 : index
    %c0_2 = arith.constant 0 : index
    %c0_3 = arith.constant 0 : index
    %1 = vector.load %arg1[%c0_1, %c0_2, %c0_3] : memref<6x128x128xf32, #tpu.memory_space<vmem>>, vector<1x128x128xf32>
    %2 = vector.shape_cast %1 : vector<1x128x128xf32> to vector<128x128xf32>
    %cst = arith.constant dense<0.000000e+00> : vector<48x128xf32>
    %3 = tpu.matmul %0, %2, %cst {dimension_numbers = #tpu.dot_dimension_numbers<[1], [0], [0], [1], [0, 0, 1, 1], [], []>} : vector<48x128xf32>, vector<128x128xf32>, vector<48x128xf32> -> vector<48x128xf32>
    %c0_4 = arith.constant 0 : index
    %c0_5 = arith.constant 0 : index
    %c0_6 = arith.constant 0 : index
    %4 = vector.load %arg2[%c0_4, %c0_5, %c0_6] : memref<6x48x48xf32, #tpu.memory_space<vmem>>, vector<1x48x48xf32>
    %5 = vector.shape_cast %4 : vector<1x48x48xf32> to vector<48x48xf32>
    %cst_7 = arith.constant dense<0.000000e+00> : vector<48x128xf32>
    %6 = tpu.matmul %5, %3, %cst_7 {dimension_numbers = #tpu.dot_dimension_numbers<[1], [0], [0], [1], [0, 0, 1, 1], [], []>} : vector<48x48xf32>, vector<48x128xf32>, vector<48x128xf32> -> vector<48x128xf32>
    %c0_8 = arith.constant 0 : index
    %c0_9 = arith.constant 0 : index
    %c0_10 = arith.constant 0 : index
    %7 = vector.load %arg3[%c0_8, %c0_9, %c0_10] : memref<6x48x128xf32, #tpu.memory_space<vmem>>, vector<1x48x128xf32>
    %8 = vector.shape_cast %7 : vector<1x48x128xf32> to vector<48x128xf32>
    %9 = arith.mulf %6, %8 : vector<48x128xf32>
    %c0_11 = arith.constant 0 : index
    %c0_12 = arith.constant 0 : index
    %c0_13 = arith.constant 0 : index
    %10 = vector.load %arg4[%c0_11, %c0_12, %c0_13] : memref<6x48x128xf32, #tpu.memory_space<vmem>>, vector<1x48x128xf32>
    %11 = vector.shape_cast %10 : vector<1x48x128xf32> to vector<48x128xf32>
    %12 = arith.addf %9, %11 : vector<48x128xf32>
    %13 = math.tanh %12 : vector<48x128xf32>
    %c1 = arith.constant 1 : index
    %c0_14 = arith.constant 0 : index
    %c0_15 = arith.constant 0 : index
    %14 = vector.load %arg1[%c1, %c0_14, %c0_15] : memref<6x128x128xf32, #tpu.memory_space<vmem>>, vector<1x128x128xf32>
    %15 = vector.shape_cast %14 : vector<1x128x128xf32> to vector<128x128xf32>
    %cst_16 = arith.constant dense<0.000000e+00> : vector<48x128xf32>
    %16 = tpu.matmul %13, %15, %cst_16 {dimension_numbers = #tpu.dot_dimension_numbers<[1], [0], [0], [1], [0, 0, 1, 1], [], []>} : vector<48x128xf32>, vector<128x128xf32>, vector<48x128xf32> -> vector<48x128xf32>
    %c1_17 = arith.constant 1 : index
    %c0_18 = arith.constant 0 : index
    %c0_19 = arith.constant 0 : index
    %17 = vector.load %arg2[%c1_17, %c0_18, %c0_19] : memref<6x48x48xf32, #tpu.memory_space<vmem>>, vector<1x48x48xf32>
    %18 = vector.shape_cast %17 : vector<1x48x48xf32> to vector<48x48xf32>
    %cst_20 = arith.constant dense<0.000000e+00> : vector<48x128xf32>
    %19 = tpu.matmul %18, %16, %cst_20 {dimension_numbers = #tpu.dot_dimension_numbers<[1], [0], [0], [1], [0, 0, 1, 1], [], []>} : vector<48x48xf32>, vector<48x128xf32>, vector<48x128xf32> -> vector<48x128xf32>
    %c1_21 = arith.constant 1 : index
    %c0_22 = arith.constant 0 : index
    %c0_23 = arith.constant 0 : index
    %20 = vector.load %arg3[%c1_21, %c0_22, %c0_23] : memref<6x48x128xf32, #tpu.memory_space<vmem>>, vector<1x48x128xf32>
    %21 = vector.shape_cast %20 : vector<1x48x128xf32> to vector<48x128xf32>
    %22 = arith.mulf %19, %21 : vector<48x128xf32>
    %c1_24 = arith.constant 1 : index
    %c0_25 = arith.constant 0 : index
    %c0_26 = arith.constant 0 : index
    %23 = vector.load %arg4[%c1_24, %c0_25, %c0_26] : memref<6x48x128xf32, #tpu.memory_space<vmem>>, vector<1x48x128xf32>
    %24 = vector.shape_cast %23 : vector<1x48x128xf32> to vector<48x128xf32>
    %25 = arith.addf %22, %24 : vector<48x128xf32>
    %26 = math.tanh %25 : vector<48x128xf32>
    %c2 = arith.constant 2 : index
    %c0_27 = arith.constant 0 : index
    %c0_28 = arith.constant 0 : index
    %27 = vector.load %arg1[%c2, %c0_27, %c0_28] : memref<6x128x128xf32, #tpu.memory_space<vmem>>, vector<1x128x128xf32>
    %28 = vector.shape_cast %27 : vector<1x128x128xf32> to vector<128x128xf32>
    %cst_29 = arith.constant dense<0.000000e+00> : vector<48x128xf32>
    %29 = tpu.matmul %26, %28, %cst_29 {dimension_numbers = #tpu.dot_dimension_numbers<[1], [0], [0], [1], [0, 0, 1, 1], [], []>} : vector<48x128xf32>, vector<128x128xf32>, vector<48x128xf32> -> vector<48x128xf32>
    %c2_30 = arith.constant 2 : index
    %c0_31 = arith.constant 0 : index
    %c0_32 = arith.constant 0 : index
    %30 = vector.load %arg2[%c2_30, %c0_31, %c0_32] : memref<6x48x48xf32, #tpu.memory_space<vmem>>, vector<1x48x48xf32>
    %31 = vector.shape_cast %30 : vector<1x48x48xf32> to vector<48x48xf32>
    %cst_33 = arith.constant dense<0.000000e+00> : vector<48x128xf32>
    %32 = tpu.matmul %31, %29, %cst_33 {dimension_numbers = #tpu.dot_dimension_numbers<[1], [0], [0], [1], [0, 0, 1, 1], [], []>} : vector<48x48xf32>, vector<48x128xf32>, vector<48x128xf32> -> vector<48x128xf32>
    %c2_34 = arith.constant 2 : index
    %c0_35 = arith.constant 0 : index
    %c0_36 = arith.constant 0 : index
    %33 = vector.load %arg3[%c2_34, %c0_35, %c0_36] : memref<6x48x128xf32, #tpu.memory_space<vmem>>, vector<1x48x128xf32>
    %34 = vector.shape_cast %33 : vector<1x48x128xf32> to vector<48x128xf32>
    %35 = arith.mulf %32, %34 : vector<48x128xf32>
    %c2_37 = arith.constant 2 : index
    %c0_38 = arith.constant 0 : index
    %c0_39 = arith.constant 0 : index
    %36 = vector.load %arg4[%c2_37, %c0_38, %c0_39] : memref<6x48x128xf32, #tpu.memory_space<vmem>>, vector<1x48x128xf32>
    %37 = vector.shape_cast %36 : vector<1x48x128xf32> to vector<48x128xf32>
    %38 = arith.addf %35, %37 : vector<48x128xf32>
    %39 = math.tanh %38 : vector<48x128xf32>
    %40 = arith.addf %39, %13 : vector<48x128xf32>
    %c3 = arith.constant 3 : index
    %c0_40 = arith.constant 0 : index
    %c0_41 = arith.constant 0 : index
    %41 = vector.load %arg1[%c3, %c0_40, %c0_41] : memref<6x128x128xf32, #tpu.memory_space<vmem>>, vector<1x128x128xf32>
    %42 = vector.shape_cast %41 : vector<1x128x128xf32> to vector<128x128xf32>
    %cst_42 = arith.constant dense<0.000000e+00> : vector<48x128xf32>
    %43 = tpu.matmul %40, %42, %cst_42 {dimension_numbers = #tpu.dot_dimension_numbers<[1], [0], [0], [1], [0, 0, 1, 1], [], []>} : vector<48x128xf32>, vector<128x128xf32>, vector<48x128xf32> -> vector<48x128xf32>
    %c3_43 = arith.constant 3 : index
    %c0_44 = arith.constant 0 : index
    %c0_45 = arith.constant 0 : index
    %44 = vector.load %arg2[%c3_43, %c0_44, %c0_45] : memref<6x48x48xf32, #tpu.memory_space<vmem>>, vector<1x48x48xf32>
    %45 = vector.shape_cast %44 : vector<1x48x48xf32> to vector<48x48xf32>
    %cst_46 = arith.constant dense<0.000000e+00> : vector<48x128xf32>
    %46 = tpu.matmul %45, %43, %cst_46 {dimension_numbers = #tpu.dot_dimension_numbers<[1], [0], [0], [1], [0, 0, 1, 1], [], []>} : vector<48x48xf32>, vector<48x128xf32>, vector<48x128xf32> -> vector<48x128xf32>
    %c3_47 = arith.constant 3 : index
    %c0_48 = arith.constant 0 : index
    %c0_49 = arith.constant 0 : index
    %47 = vector.load %arg3[%c3_47, %c0_48, %c0_49] : memref<6x48x128xf32, #tpu.memory_space<vmem>>, vector<1x48x128xf32>
    %48 = vector.shape_cast %47 : vector<1x48x128xf32> to vector<48x128xf32>
    %49 = arith.mulf %46, %48 : vector<48x128xf32>
    %c3_50 = arith.constant 3 : index
    %c0_51 = arith.constant 0 : index
    %c0_52 = arith.constant 0 : index
    %50 = vector.load %arg4[%c3_50, %c0_51, %c0_52] : memref<6x48x128xf32, #tpu.memory_space<vmem>>, vector<1x48x128xf32>
    %51 = vector.shape_cast %50 : vector<1x48x128xf32> to vector<48x128xf32>
    %52 = arith.addf %49, %51 : vector<48x128xf32>
    %53 = math.tanh %52 : vector<48x128xf32>
    %c4 = arith.constant 4 : index
    %c0_53 = arith.constant 0 : index
    %c0_54 = arith.constant 0 : index
    %54 = vector.load %arg1[%c4, %c0_53, %c0_54] : memref<6x128x128xf32, #tpu.memory_space<vmem>>, vector<1x128x128xf32>
    %55 = vector.shape_cast %54 : vector<1x128x128xf32> to vector<128x128xf32>
    %cst_55 = arith.constant dense<0.000000e+00> : vector<48x128xf32>
    %56 = tpu.matmul %53, %55, %cst_55 {dimension_numbers = #tpu.dot_dimension_numbers<[1], [0], [0], [1], [0, 0, 1, 1], [], []>} : vector<48x128xf32>, vector<128x128xf32>, vector<48x128xf32> -> vector<48x128xf32>
    %c4_56 = arith.constant 4 : index
    %c0_57 = arith.constant 0 : index
    %c0_58 = arith.constant 0 : index
    %57 = vector.load %arg2[%c4_56, %c0_57, %c0_58] : memref<6x48x48xf32, #tpu.memory_space<vmem>>, vector<1x48x48xf32>
    %58 = vector.shape_cast %57 : vector<1x48x48xf32> to vector<48x48xf32>
    %cst_59 = arith.constant dense<0.000000e+00> : vector<48x128xf32>
    %59 = tpu.matmul %58, %56, %cst_59 {dimension_numbers = #tpu.dot_dimension_numbers<[1], [0], [0], [1], [0, 0, 1, 1], [], []>} : vector<48x48xf32>, vector<48x128xf32>, vector<48x128xf32> -> vector<48x128xf32>
    %c4_60 = arith.constant 4 : index
    %c0_61 = arith.constant 0 : index
    %c0_62 = arith.constant 0 : index
    %60 = vector.load %arg3[%c4_60, %c0_61, %c0_62] : memref<6x48x128xf32, #tpu.memory_space<vmem>>, vector<1x48x128xf32>
    %61 = vector.shape_cast %60 : vector<1x48x128xf32> to vector<48x128xf32>
    %62 = arith.mulf %59, %61 : vector<48x128xf32>
    %c4_63 = arith.constant 4 : index
    %c0_64 = arith.constant 0 : index
    %c0_65 = arith.constant 0 : index
    %63 = vector.load %arg4[%c4_63, %c0_64, %c0_65] : memref<6x48x128xf32, #tpu.memory_space<vmem>>, vector<1x48x128xf32>
    %64 = vector.shape_cast %63 : vector<1x48x128xf32> to vector<48x128xf32>
    %65 = arith.addf %62, %64 : vector<48x128xf32>
    %66 = math.tanh %65 : vector<48x128xf32>
    %67 = arith.addf %66, %40 : vector<48x128xf32>
    %c5 = arith.constant 5 : index
    %c0_66 = arith.constant 0 : index
    %c0_67 = arith.constant 0 : index
    %68 = vector.load %arg1[%c5, %c0_66, %c0_67] : memref<6x128x128xf32, #tpu.memory_space<vmem>>, vector<1x128x128xf32>
    %69 = vector.shape_cast %68 : vector<1x128x128xf32> to vector<128x128xf32>
    %cst_68 = arith.constant dense<0.000000e+00> : vector<48x128xf32>
    %70 = tpu.matmul %67, %69, %cst_68 {dimension_numbers = #tpu.dot_dimension_numbers<[1], [0], [0], [1], [0, 0, 1, 1], [], []>} : vector<48x128xf32>, vector<128x128xf32>, vector<48x128xf32> -> vector<48x128xf32>
    %c5_69 = arith.constant 5 : index
    %c0_70 = arith.constant 0 : index
    %c0_71 = arith.constant 0 : index
    %71 = vector.load %arg2[%c5_69, %c0_70, %c0_71] : memref<6x48x48xf32, #tpu.memory_space<vmem>>, vector<1x48x48xf32>
    %72 = vector.shape_cast %71 : vector<1x48x48xf32> to vector<48x48xf32>
    %cst_72 = arith.constant dense<0.000000e+00> : vector<48x128xf32>
    %73 = tpu.matmul %72, %70, %cst_72 {dimension_numbers = #tpu.dot_dimension_numbers<[1], [0], [0], [1], [0, 0, 1, 1], [], []>} : vector<48x48xf32>, vector<48x128xf32>, vector<48x128xf32> -> vector<48x128xf32>
    %c5_73 = arith.constant 5 : index
    %c0_74 = arith.constant 0 : index
    %c0_75 = arith.constant 0 : index
    %74 = vector.load %arg3[%c5_73, %c0_74, %c0_75] : memref<6x48x128xf32, #tpu.memory_space<vmem>>, vector<1x48x128xf32>
    %75 = vector.shape_cast %74 : vector<1x48x128xf32> to vector<48x128xf32>
    %76 = arith.mulf %73, %75 : vector<48x128xf32>
    %c5_76 = arith.constant 5 : index
    %c0_77 = arith.constant 0 : index
    %c0_78 = arith.constant 0 : index
    %77 = vector.load %arg4[%c5_76, %c0_77, %c0_78] : memref<6x48x128xf32, #tpu.memory_space<vmem>>, vector<1x48x128xf32>
    %78 = vector.shape_cast %77 : vector<1x48x128xf32> to vector<48x128xf32>
    %79 = arith.addf %76, %78 : vector<48x128xf32>
    %80 = arith.addf %79, %0 : vector<48x128xf32>
    %c0_79 = arith.constant 0 : index
    %c0_80 = arith.constant 0 : index
    %81 = vector.load %arg5[%c0_79, %c0_80] : memref<48x128xf32, #tpu.memory_space<vmem>>, vector<48x128xf32>
    tpu.vector_store %arg5[%c0_79, %c0_80], %80 {strides = array<i32>} : memref<48x128xf32, #tpu.memory_space<vmem>>, vector<48x128xf32>,
    return
  }
}

</mosaic_0001>

<bundles_post_ra>
// kernel: motion_gcn_forward.1
= control target key start
LH: loop header
LB: loop body
LE: loop exit
PB: predicated region body
PF: predicated region fallthrough
CT: control target
= control target key end

     0   :  { %10 = vsyncpa [#allocation3], 0  ;;  %s3052_s0 = inlined_call_operand.vmem [shape: f32[48,128], index: 0, kind: input, shape index: {}]   ;;  %s3053_s1 = inlined_call_operand.hbm [shape: f32[6,128,128], index: 1, kind: input, shape index: {}]   ;;  %s3054_s2 = inlined_call_operand.vmem [shape: f32[6,48,48], index: 2, kind: input, shape index: {}]   ;;  %s3055_s3 = inlined_call_operand.hbm [shape: f32[6,48,128], index: 3, kind: input, shape index: {}]   ;;  %s3056_s4 = inlined_call_operand.hbm [shape: f32[6,48,128], index: 4, kind: input, shape index: {}]   ;;  %s3057_s5 = inlined_call_operand.vmem [shape: f32[48,128], index: 5, kind: output, shape index: {}]  }
   0x1   :  { %11 = vsyncpa [#allocation5], 0  ;;  %s2719_s18 = smov [#allocation4]   ;;  %s2720_s20 = smov [#allocation2]  }
   0x2   :  { %s33_s19 = sshll.u32 %s2719_s18, 4  ;;  %s19_s21 = sshll.u32 %s2720_s20, 4  ;;  %s34_s19 = int_to_ptr.vmem [resolvable:$true] %s33_s19  ;;  %s2754_s21 = int_to_ptr.vmem [resolvable:$true] %s19_s21 }
   0x3   :  { %s2649_s24 = scalar_lea.hbm %s3055_s3, 4608 }
   0x4   :  { %p2650_p0 = scmp.ne.s32.totalorder %s3055_s3, %s2649_s24  ;;  %p2653_p1 = scmp.lt.u32.totalorder %s2649_s24, %s3055_s3 }
   0x6   :  { %p2655_p2 = pnand %p2653_p1, %p2650_p0 }
   0x8   :  { %2658 = shalt.err (!%p2655_p2)
}
   0x9   :  { %s2659_s29 = scalar_lea.vmem %s34_s19, 4608  ;;  %p2664_p4 = scmp.lt.s32.totalorder %s34_s19, %s34_s19 }
   0xa   :  { %p2660_p3 = scmp.ne.s32.totalorder %s34_s19, %s2659_s29  ;;  %p2665_p5 = scmp.lt.s32.totalorder %s2659_s29, %s2659_s29 }
   0xc   :  { %p2666_p6 = por %p2665_p5, %p2664_p4 }
   0xe   :  { %p2667_p7 = pnand %p2666_p6, %p2660_p3 }
  0x10   :  { %2670 = shalt.err (!%p2667_p7)
}
  0x11   :  { %s2721_s30 = smov 128   ;;  %s2722_s6 = smov 8  }
  0x12   :  { %39 = dma.hbm_to_vmem [thread:$0]  %s3055_s3, 4608, %s34_s19, [#allocation5], %s2721_s30, %s2721_s30, %s2722_s6  }
  0x13   :  { %s2671_s11 = scalar_lea.hbm %s3053_s1, 12288 }
  0x14   :  { %p2672_p8 = scmp.ne.s32.totalorder %s3053_s1, %s2671_s11  ;;  %p2675_p9 = scmp.lt.u32.totalorder %s2671_s11, %s3053_s1 }
  0x16   :  { %p2677_p10 = pnand %p2675_p9, %p2672_p8 }
  0x18   :  { %2680 = shalt.err (!%p2677_p10)
}
  0x19   :  { %s2681_s16 = scalar_lea.vmem %s2754_s21, 12288  ;;  %p2686_p12 = scmp.lt.s32.totalorder %s2754_s21, %s2754_s21 }
  0x1a   :  { %p2682_p11 = scmp.ne.s32.totalorder %s2754_s21, %s2681_s16  ;;  %p2687_p13 = scmp.lt.s32.totalorder %s2681_s16, %s2681_s16 }
  0x1c   :  { %p2688_p0 = por %p2687_p13, %p2686_p12 }
  0x1e   :  { %p2689_p1 = pnand %p2688_p0, %p2682_p11 }
  0x20   :  { %2692 = shalt.err (!%p2689_p1)
}
  0x21   :  { %25 = dma.hbm_to_vmem [thread:$0]  %s3053_s1, 12288, %s2754_s21, [#allocation3], %s2721_s30, %s2721_s30, %s2722_s6  }
  0x22   :  { %s2723_s18 = smov [#allocation6]   ;;  %s2693_s23 = scalar_lea.hbm %s3056_s4, 4608 }
  0x23   :  { %s45_s19 = sshll.u32 %s2723_s18, 4  ;;  %p2694_p2 = scmp.ne.s32.totalorder %s3056_s4, %s2693_s23  ;;  %s46_s19 = int_to_ptr.vmem [resolvable:$true] %s45_s19 }
  0x24   :  { %p2697_p3 = scmp.lt.u32.totalorder %s2693_s23, %s3056_s4 }
  0x26   :  { %p2699_p4 = pnand %p2697_p3, %p2694_p2 }
  0x28   :  { %2702 = shalt.err (!%p2699_p4)
}
  0x29   :  { %s2703_s28 = scalar_lea.vmem %s46_s19, 4608  ;;  %p2708_p6 = scmp.lt.s32.totalorder %s46_s19, %s46_s19 }
  0x2a   :  { %p2704_p5 = scmp.ne.s32.totalorder %s46_s19, %s2703_s28  ;;  %p2709_p7 = scmp.lt.s32.totalorder %s2703_s28, %s2703_s28 }
  0x2c   :  { %p2710_p8 = por %p2709_p7, %p2708_p6 }
  0x2e   :  { %p2711_p9 = pnand %p2710_p8, %p2704_p5 }
  0x30   :  { %2714 = shalt.err (!%p2711_p9)
}
  0x31   :  { %51 = dma.hbm_to_vmem [thread:$0]  %s3056_s4, 4608, %s46_s19, [#allocation5], %s2721_s30, %s2721_s30, %s2722_s6  }
  0x32   :  { %2715 = dma.done.wait [#allocation3], 12288  }
  0x33   :  { %2716 = vsyncadd [#allocation3], 4294955008 }
  0x34   :  { %2717 = dma.done.wait [#allocation5], 9216  }
  0x35   :  { %2718 = vsyncadd [#allocation5], 4294958080  ;;  %v67_v0 = vld [vmem:[#allocation2] sm:$0xff]  ;;  %v68_v1 = vld [vmem:[#allocation2 + $0x8] sm:$0xff]  ;;  %vm184_vm0 = vcmask 392192  }
  0x36   :  { %v69_v2 = vld [vmem:[#allocation2 + $0x10] sm:$0xff]  ;;  %v2314_v3 = vpack.c.bf16 %v68_v1, %v67_v0  ;;  %v70_v4 = vld [vmem:[#allocation2 + $0x18] sm:$0xff]  ;;  %v71_v6 = vld [vmem:[#allocation2 + $0x20] sm:$0xff] }
  0x37   :  { %v2318_v5 = vpack.c.bf16 %v70_v4, %v69_v2  ;;  %v72_v7 = vld [vmem:[#allocation2 + $0x28] sm:$0xff]  ;;  %v61_v9 = vld [vmem:[%s3052_s0] sm:$0xff]  ;;  %v73_v10 = vld [vmem:[#allocation2 + $0x30] sm:$0xff] }
  0x38   :  { %2315 = vmatprep.subr.bf16.mxu0 %v2314_v3  ;;  %v2322_v8 = vpack.c.bf16 %v72_v7, %v71_v6  ;;  %v74_v11 = vld [vmem:[#allocation2 + $0x38] sm:$0xff]  ;;  %1974 = vmatprep.mubr.f32.mxu0 %v61_v9  ;;  %v75_v13 = vld [vmem:[#allocation2 + $0x40] sm:$0xff]  ;;  %v76_v14 = vld [vmem:[#allocation2 + $0x48] sm:$0xff] }
  0x39   :  { %2317 = vmatpush3.bf16.msra.mxu0 %v2314_v3  ;;  %v2326_v12 = vpack.c.bf16 %v74_v11, %v73_v10  ;;  %v2330_v15 = vpack.c.bf16 %v76_v14, %v75_v13  ;;  %v77_v16 = vld [vmem:[#allocation2 + $0x50] sm:$0xff]  ;;  %v78_v17 = vld [vmem:[#allocation2 + $0x58] sm:$0xff]  ;;  %v79_v19 = vld [vmem:[#allocation2 + $0x60] sm:$0xff] }
  0x3a   :  { %2319 = vmatprep.subr.bf16.mxu0 %v2318_v5  ;;  %v2334_v18 = vpack.c.bf16 %v78_v17, %v77_v16  ;;  %v80_v20 = vld [vmem:[#allocation2 + $0x68] sm:$0xff]  ;;  %v81_v22 = vld [vmem:[#allocation2 + $0x70] sm:$0xff]  ;;  %v82_v23 = vld [vmem:[#allocation2 + $0x78] sm:$0xff] }
  0x3b   :  { %v2338_v21 = vpack.c.bf16 %v80_v20, %v79_v19  ;;  %v2342_v24 = vpack.c.bf16 %v82_v23, %v81_v22  ;;  %v62_v25 = vld [vmem:[%s3052_s0 + $0x8] sm:$0xff]  ;;  %v63_v26 = vld [vmem:[%s3052_s0 + $0x10] sm:$0xff]  ;;  %v64_v27 = vld [vmem:[%s3052_s0 + $0x18] sm:$0xff] }
  0x3c   :  { %v65_v28 = vld [vmem:[%s3052_s0 + $0x20] sm:$0xff]  ;;  %v66_v29 = vld [vmem:[%s3052_s0 + $0x28] sm:$0xff]  ;;  %v331_v43 = vld [vmem:[#allocation2 + $0x90] sm:$0xff] }
  0x3d   :  { %2321 = vmatpush3.bf16.msra.mxu0 %v2318_v5  ;;  %v178_v30 = vld [vmem:[%s3054_s2] sm:$0xff]  ;;  %v330_v38 = vld [vmem:[#allocation2 + $0x88] sm:$0xff]  ;;  %v332_v44 = vld [vmem:[#allocation2 + $0x98] sm:$0xff] }
  0x3e   :  { %2323 = vmatprep.subr.bf16.mxu0 %v2322_v8  ;;  %1995 = vmatprep.mubr.msk.f32.mxu1 %vm184_vm0, %v178_v30  ;;  %v329_v37 = vld [vmem:[#allocation2 + $0x80] sm:$0xff]  ;;  %v179_v45 = vld [vmem:[%s3054_s2 + $0x8] sm:$0xff]  ;;  %v180_v46 = vld [vmem:[%s3054_s2 + $0x10] sm:$0xff]  ;;  %v2362_v47 = vpack.c.bf16 %v332_v44, %v331_v43 }
  0x3f   :  { %v2358_v42 = vpack.c.bf16 %v330_v38, %v329_v37  ;;  %v333_v48 = vld [vmem:[#allocation2 + $0xa0] sm:$0xff]  ;;  %v334_v49 = vld [vmem:[#allocation2 + $0xa8] sm:$0xff]  ;;  %v181_v50 = vld [vmem:[%s3054_s2 + $0x18] sm:$0xff] }
  0x40   :  { %v182_v51 = vld [vmem:[%s3054_s2 + $0x20] sm:$0xff]  ;;  %v2366_v52 = vpack.c.bf16 %v334_v49, %v333_v48  ;;  %v335_v53 = vld [vmem:[#allocation2 + $0xb0] sm:$0xff]  ;;  %v336_v54 = vld [vmem:[#allocation2 + $0xb8] sm:$0xff] }
  0x41   :  { %2325 = vmatpush3.bf16.msra.mxu0 %v2322_v8  ;;  %v183_v55 = vld [vmem:[%s3054_s2 + $0x28] sm:$0xff]  ;;  %v2370_v56 = vpack.c.bf16 %v336_v54, %v335_v53  ;;  %v337_v57 = vld [vmem:[#allocation2 + $0xc0] sm:$0xff]  ;;  %v339_v60 = vld [vmem:[#allocation2 + $0xd0] sm:$0xff] }
  0x42   :  { %2327 = vmatprep.subr.bf16.mxu0 %v2326_v12  ;;  %v338_v58 = vld [vmem:[#allocation2 + $0xc8] sm:$0xff]  ;;  %v340_v61 = vld [vmem:[#allocation2 + $0xd8] sm:$0xff]  ;;  %v341_v63 = vld [vmem:[#allocation2 + $0xe0] sm:$0xff] }
  0x43   :  { %v2374_v59 = vpack.c.bf16 %v338_v58, %v337_v57  ;;  %v2378_v62 = vpack.c.bf16 %v340_v61, %v339_v60  ;;  %v342_v0 = vld [vmem:[#allocation2 + $0xe8] sm:$0xff]  ;;  %v343_v2 = vld [vmem:[#allocation2 + $0xf0] sm:$0xff]  ;;  %v344_v3 = vld [vmem:[#allocation2 + $0xf8] sm:$0xff] }
  0x44   :  { %v2382_v1 = vpack.c.bf16 %v342_v0, %v341_v63  ;;  %v2386_v4 = vpack.c.bf16 %v344_v3, %v343_v2  ;;  %v299_v5 = vld [vmem:[#allocation4 + $0x8] sm:$0xff]  ;;  %v298_v6 = vld [vmem:[#allocation4] sm:$0xff]  ;;  %v301_v13 = vld [vmem:[#allocation4 + $0x18] sm:$0xff] }
  0x45   :  { %2329 = vmatpush3.bf16.msra.mxu0 %v2326_v12  ;;  %v311_v8 = vld [vmem:[#allocation6 + $0x8] sm:$0xff]  ;;  %v310_v11 = vld [vmem:[#allocation6] sm:$0xff]  ;;  %v595_v54 = vld [vmem:[#allocation2 + $0x110] sm:$0xff] }
  0x46   :  { %2331 = vmatprep.subr.bf16.mxu0 %v2330_v15  ;;  %v303_v23 = vld [vmem:[#allocation4 + $0x28] sm:$0xff]  ;;  %v593_v48 = vld [vmem:[#allocation2 + $0x100] sm:$0xff]  ;;  %v599_v0 = vld [vmem:[#allocation2 + $0x130] sm:$0xff] }
  0x47   :  { %v594_v49 = vld [vmem:[#allocation2 + $0x108] sm:$0xff]  ;;  %v1680_v57 = vld [vmem:[%s3054_s2 + $0x40] sm:$0xff]  ;;  %v1683_v2 = vld [vmem:[%s3054_s2 + $0x58] sm:$0xff] }
  0x48   :  { %v2402_v53 = vpack.c.bf16 %v594_v49, %v593_v48  ;;  %v598_v60 = vld [vmem:[#allocation2 + $0x128] sm:$0xff]  ;;  %v578_v48 = vld [vmem:[#allocation6 + $0x50] sm:$0xff] }
  0x49   :  { %2333 = vmatpush3.bf16.msra.mxu0 %v2330_v15  ;;  %v300_v15 = vld [vmem:[#allocation4 + $0x10] sm:$0xff]  ;;  %v1681_v61 = vld [vmem:[%s3054_s2 + $0x48] sm:$0xff] }
  0x4a   :  { %2335 = vmatprep.subr.bf16.mxu0 %v2334_v18 }
  0x4d   :  { %2337 = vmatpush3.bf16.msra.mxu0 %v2334_v18  ;;  %v313_v18 = vld [vmem:[#allocation6 + $0x18] sm:$0xff] }
  0x4e   :  { %2339 = vmatprep.subr.bf16.mxu0 %v2338_v21 }
  0x51   :  { %2341 = vmatpush3.bf16.msra.mxu0 %v2338_v21  ;;  %v312_v21 = vld [vmem:[#allocation6 + $0x10] sm:$0xff] }
  0x52   :  { %2343 = vmatprep.subr.bf16.mxu0 %v2342_v24 }
  0x55   :  { %2345 = vmatpush3.bf16.msra.mxu0 %v2342_v24 }
  0x58   :  { %1975 = vmatmul.mubr.f32.vlgmr.msra.gmra.mrb[0].mxu0 %v62_v25  ;;  %v302_v25 = vld [vmem:[#allocation4 + $0x20] sm:$0xff] }
  0x59   :  { %1977 = vmatprep.mubr.f32.mxu0 %v63_v26 }
  0x5c   :  { %1978 = vmatmul.mubr.f32.gmra.mrb[2].mxu0 %v64_v27 }
  0x5d   :  { %1980 = vmatprep.mubr.f32.mxu0 %v65_v28  ;;  %v315_v28 = vld [vmem:[#allocation6 + $0x28] sm:$0xff] }
  0x60   :  { %1981 = vmatmul.mubr.f32.gmra.mrb[4].mxu0 %v66_v29 }
 0x12b   :  { %v1976_v31 = vpop.f32.mrb[0].mxu0 }
 0x12c   :  { %v149_v32 = vpop.f32.mrb[1].mxu0 }
 0x12d   :  { %v2346_v33 = vpack.c.bf16 %v1976_v31, %v149_v32  ;;  %v314_v31 = vld [vmem:[#allocation6 + $0x20] sm:$0xff] }
 0x12f   :  { %v1979_v34 = vpop.f32.mrb[2].mxu0  ;;  %2347 = vmatprep.subr.bf16.mxu1 %v2346_v33 }
 0x130   :  { %v159_v35 = vpop.f32.mrb[3].mxu0  ;;  %2349 = vmatpush3.bf16.msra.mxu1 %v2346_v33 }
 0x131   :  { %v2350_v36 = vpack.c.bf16 %v1979_v34, %v159_v35 }
 0x133   :  { %v1982_v39 = vpop.f32.mrb[4].mxu0  ;;  %2351 = vmatprep.subr.bf16.mxu1 %v2350_v36 }
 0x134   :  { %v169_v40 = vpop.f32.mrb[5].mxu0  ;;  %2353 = vmatpush3.bf16.msra.mxu1 %v2350_v36 }
 0x135   :  { %v2354_v41 = vpack.c.bf16 %v1982_v39, %v169_v40 }
 0x137   :  { %2355 = vmatprep.subr.bf16.mxu1 %v2354_v41 }
 0x138   :  { %2357 = vmatpush3.bf16.msra.mxu1 %v2354_v41  ;;  %v1678_v41 = vld [vmem:[%s3054_s2 + $0x30] sm:$0xff] }
 0x139   :  { %2359 = vmatprep.subr.bf16.mxu1 %v2358_v42  ;;  %2057 = vmatprep.mubr.msk.f32.mxu0 %vm184_vm0, %v1678_v41 }
 0x13b   :  { %1996 = vmatmul.mubr.msk.f32.vlgmr.msra.gmra.mrb[0].mxu1 %vm184_vm0, %v179_v45 }
 0x13c   :  { %1998 = vmatprep.mubr.msk.f32.mxu1 %vm184_vm0, %v180_v46  ;;  %2361 = vmatpush3.bf16.msra.mxu1 %v2358_v42 }
 0x13d   :  { %2363 = vmatprep.subr.bf16.mxu1 %v2362_v47 }
 0x13f   :  { %1999 = vmatmul.mubr.msk.f32.gmra.mrb[2].mxu1 %vm184_vm0, %v181_v50 }
 0x140   :  { %2001 = vmatprep.mubr.msk.f32.mxu1 %vm184_vm0, %v182_v51  ;;  %2365 = vmatpush3.bf16.msra.mxu1 %v2362_v47 }
 0x141   :  { %2367 = vmatprep.subr.bf16.mxu1 %v2366_v52 }
 0x143   :  { %2002 = vmatmul.mubr.msk.f32.gmra.mrb[4].mxu1 %vm184_vm0, %v183_v55  ;;  %v596_v55 = vld [vmem:[#allocation2 + $0x118] sm:$0xff] }
 0x144   :  { %2369 = vmatpush3.bf16.msra.mxu1 %v2366_v52  ;;  %v2406_v58 = vpack.c.bf16 %v596_v55, %v595_v54 }
 0x145   :  { %2371 = vmatprep.subr.bf16.mxu1 %v2370_v56 }
 0x148   :  { %2373 = vmatpush3.bf16.msra.mxu1 %v2370_v56  ;;  %v1679_v56 = vld [vmem:[%s3054_s2 + $0x38] sm:$0xff] }
 0x149   :  { %2375 = vmatprep.subr.bf16.mxu1 %v2374_v59 }
 0x14c   :  { %2377 = vmatpush3.bf16.msra.mxu1 %v2374_v59  ;;  %v597_v59 = vld [vmem:[#allocation2 + $0x120] sm:$0xff] }
 0x14d   :  { %2379 = vmatprep.subr.bf16.mxu1 %v2378_v62  ;;  %v2410_v63 = vpack.c.bf16 %v598_v60, %v597_v59 }
 0x150   :  { %2381 = vmatpush3.bf16.msra.mxu1 %v2378_v62  ;;  %v1682_v62 = vld [vmem:[%s3054_s2 + $0x50] sm:$0xff] }
 0x151   :  { %2383 = vmatprep.subr.bf16.mxu1 %v2382_v1 }
 0x154   :  { %2385 = vmatpush3.bf16.msra.mxu1 %v2382_v1  ;;  %v600_v1 = vld [vmem:[#allocation2 + $0x138] sm:$0xff] }
 0x155   :  { %2387 = vmatprep.subr.bf16.mxu1 %v2386_v4  ;;  %v2414_v3 = vpack.c.bf16 %v600_v1, %v599_v0  ;;  %v863_v1 = vld [vmem:[#allocation2 + $0x180] sm:$0xff] }
 0x158   :  { %2389 = vmatpush3.bf16.msra.mxu1 %v2386_v4  ;;  %v601_v4 = vld [vmem:[#allocation2 + $0x140] sm:$0xff] }
 0x20e   :  { %v1997_v7 = vpop.f32.mrb[0].mxu1 }
 0x20f   :  { %v305_v9 = vmul.f32 %v1997_v7, %v299_v5  ;;  %v269_v10 = vpop.f32.mrb[1].mxu1  ;;  %v602_v5 = vld [vmem:[#allocation2 + $0x148] sm:$0xff]  ;;  %v603_v7 = vld [vmem:[#allocation2 + $0x150] sm:$0xff] }
 0x210   :  { %v304_v12 = vmul.f32 %v298_v6, %v269_v10  ;;  %v2418_v6 = vpack.c.bf16 %v602_v5, %v601_v4  ;;  %v605_v10 = vld [vmem:[#allocation2 + $0x160] sm:$0xff] }
 0x211   :  { %v317_v14 = vadd.f32 %v311_v8, %v305_v9  ;;  %v604_v8 = vld [vmem:[#allocation2 + $0x158] sm:$0xff] }
 0x212   :  { %v316_v16 = vadd.f32 %v310_v11, %v304_v12  ;;  %v2000_v17 = vpop.f32.mrb[2].mxu1  ;;  %v2422_v9 = vpack.c.bf16 %v604_v8, %v603_v7  ;;  %v606_v11 = vld [vmem:[#allocation2 + $0x168] sm:$0xff]  ;;  %v865_v7 = vld [vmem:[#allocation2 + $0x190] sm:$0xff]  ;;  %v866_v8 = vld [vmem:[#allocation2 + $0x198] sm:$0xff] }
 0x213   :  { %v307_v19 = vmul.f32 %v2000_v17, %v301_v13  ;;  %v279_v20 = vpop.f32.mrb[3].mxu1  ;;  %v2426_v12 = vpack.c.bf16 %v606_v11, %v605_v10  ;;  %v607_v13 = vld [vmem:[#allocation2 + $0x170] sm:$0xff]  ;;  %v2450_v11 = vpack.c.bf16 %v866_v8, %v865_v7 }
 0x214   :  { %2583 = vtanh.f32 %v316_v16  ;;  %v306_v22 = vmul.f32 %v300_v15, %v279_v20  ;;  %v562_v16 = vld [vmem:[#allocation4 + $0x38] sm:$0xff]  ;;  %v561_v17 = vld [vmem:[#allocation4 + $0x30] sm:$0xff] }
 0x215   :  { %2585 = vtanh.f32 %v317_v14  ;;  %v319_v24 = vadd.f32 %v313_v18, %v307_v19  ;;  %v608_v14 = vld [vmem:[#allocation2 + $0x178] sm:$0xff]  ;;  %v1692_v10 = vld [vmem:[%s3054_s2 + $0x70] sm:$0xff] }
 0x216   :  { %v318_v26 = vadd.f32 %v312_v21, %v306_v22  ;;  %v2003_v27 = vpop.f32.mrb[4].mxu1  ;;  %v2430_v15 = vpack.c.bf16 %v608_v14, %v607_v13  ;;  %v575_v19 = vld [vmem:[#allocation6 + $0x38] sm:$0xff]  ;;  %v574_v22 = vld [vmem:[#allocation6 + $0x30] sm:$0xff]  ;;  %v868_v13 = vld [vmem:[#allocation2 + $0x1a8] sm:$0xff] }
 0x217   :  { %v309_v29 = vmul.f32 %v2003_v27, %v303_v23  ;;  %v289_v30 = vpop.f32.mrb[5].mxu1  ;;  %v1693_v14 = vld [vmem:[%s3054_s2 + $0x78] sm:$0xff] }
 0x218   :  { %2587 = vtanh.f32 %v318_v26  ;;  %v308_v32 = vmul.f32 %v302_v25, %v289_v30  ;;  %v563_v26 = vld [vmem:[#allocation4 + $0x40] sm:$0xff] }
 0x219   :  { %2589 = vtanh.f32 %v319_v24  ;;  %v321_v33 = vadd.f32 %v315_v28, %v309_v29  ;;  %v564_v24 = vld [vmem:[#allocation4 + $0x48] sm:$0xff] }
 0x21a   :  { %v320_v34 = vadd.f32 %v314_v31, %v308_v32  ;;  %v577_v29 = vld [vmem:[#allocation6 + $0x48] sm:$0xff]  ;;  %v576_v32 = vld [vmem:[#allocation6 + $0x40] sm:$0xff] }
 0x21c   :  { %2591 = vtanh.f32 %v320_v34  ;;  %v566_v34 = vld [vmem:[#allocation4 + $0x58] sm:$0xff] }
 0x21d   :  { %2593 = vtanh.f32 %v321_v33 }
 0x21e   :  { %v2848_v35 = vpop.eup %2583 }
 0x21f   :  { %v2850_v36 = vpop.eup %2585  ;;  %2036 = vmatprep.mubr.f32.mxu1 %v2848_v35 }
 0x220   :  { %2037 = vmatmul.mubr.f32.vlgmr.msra.gmra.mrb[6].mxu1 %v2850_v36 }
 0x222   :  { %v2854_v37 = vpop.eup %2587 }
 0x223   :  { %v2856_v38 = vpop.eup %2589  ;;  %2039 = vmatprep.mubr.f32.mxu1 %v2854_v37 }
 0x224   :  { %2040 = vmatmul.mubr.f32.gmra.mrb[8].mxu1 %v2856_v38 }
 0x226   :  { %v2860_v39 = vpop.eup %2591 }
 0x227   :  { %v2862_v40 = vpop.eup %2593  ;;  %2042 = vmatprep.mubr.f32.mxu1 %v2860_v39 }
 0x228   :  { %2043 = vmatmul.mubr.f32.gmra.mrb[10].mxu1 %v2862_v40 }
 0x2f3   :  { %v2038_v42 = vpop.f32.mrb[6].mxu1 }
 0x2f4   :  { %v411_v43 = vpop.f32.mrb[7].mxu1 }
 0x2f5   :  { %v2390_v44 = vpack.c.bf16 %v2038_v42, %v411_v43  ;;  %v565_v42 = vld [vmem:[#allocation4 + $0x50] sm:$0xff] }
 0x2f7   :  { %v2041_v45 = vpop.f32.mrb[8].mxu1  ;;  %2391 = vmatprep.subr.bf16.mxu0 %v2390_v44 }
 0x2f8   :  { %v421_v46 = vpop.f32.mrb[9].mxu1  ;;  %2393 = vmatpush3.bf16.msra.mxu0 %v2390_v44 }
 0x2f9   :  { %v2394_v47 = vpack.c.bf16 %v2041_v45, %v421_v46  ;;  %v579_v45 = vld [vmem:[#allocation6 + $0x58] sm:$0xff] }
 0x2fb   :  { %v2044_v50 = vpop.f32.mrb[10].mxu1  ;;  %2395 = vmatprep.subr.bf16.mxu0 %v2394_v47 }
 0x2fc   :  { %v431_v51 = vpop.f32.mrb[11].mxu1  ;;  %2397 = vmatpush3.bf16.msra.mxu0 %v2394_v47 }
 0x2fd   :  { %v2398_v52 = vpack.c.bf16 %v2044_v50, %v431_v51 }
 0x2ff   :  { %2399 = vmatprep.subr.bf16.mxu0 %v2398_v52 }
 0x300   :  { %2401 = vmatpush3.bf16.msra.mxu0 %v2398_v52 }
 0x301   :  { %2403 = vmatprep.subr.bf16.mxu0 %v2402_v53 }
 0x303   :  { %2058 = vmatmul.mubr.msk.f32.vlgmr.msra.gmra.mrb[6].mxu0 %vm184_vm0, %v1679_v56 }
 0x304   :  { %2060 = vmatprep.mubr.msk.f32.mxu0 %vm184_vm0, %v1680_v57  ;;  %2405 = vmatpush3.bf16.msra.mxu0 %v2402_v53 }
 0x305   :  { %2407 = vmatprep.subr.bf16.mxu0 %v2406_v58 }
 0x307   :  { %2061 = vmatmul.mubr.msk.f32.gmra.mrb[8].mxu0 %vm184_vm0, %v1681_v61 }
 0x308   :  { %2063 = vmatprep.mubr.msk.f32.mxu0 %vm184_vm0, %v1682_v62  ;;  %2409 = vmatpush3.bf16.msra.mxu0 %v2406_v58  ;;  %v1690_v58 = vld [vmem:[%s3054_s2 + $0x60] sm:$0xff] }
 0x309   :  { %2411 = vmatprep.subr.bf16.mxu0 %v2410_v63  ;;  %2119 = vmatprep.mubr.msk.f32.mxu1 %vm184_vm0, %v1690_v58 }
 0x30b   :  { %2064 = vmatmul.mubr.msk.f32.gmra.mrb[10].mxu0 %vm184_vm0, %v1683_v2  ;;  %v864_v2 = vld [vmem:[#allocation2 + $0x188] sm:$0xff] }
 0x30c   :  { %2413 = vmatpush3.bf16.msra.mxu0 %v2410_v63 }
 0x30d   :  { %2415 = vmatprep.subr.bf16.mxu0 %v2414_v3 }
 0x310   :  { %2417 = vmatpush3.bf16.msra.mxu0 %v2414_v3 }
 0x311   :  { %2419 = vmatprep.subr.bf16.mxu0 %v2418_v6 }
 0x314   :  { %2421 = vmatpush3.bf16.msra.mxu0 %v2418_v6  ;;  %v2446_v6 = vpack.c.bf16 %v864_v2, %v863_v1  ;;  %v842_v1 = vld [vmem:[#allocation6 + $0x80] sm:$0xff] }
 0x315   :  { %2423 = vmatprep.subr.bf16.mxu0 %v2422_v9 }
 0x318   :  { %2425 = vmatpush3.bf16.msra.mxu0 %v2422_v9  ;;  %v1691_v9 = vld [vmem:[%s3054_s2 + $0x68] sm:$0xff] }
 0x319   :  { %2427 = vmatprep.subr.bf16.mxu0 %v2426_v12 }
 0x31c   :  { %2429 = vmatpush3.bf16.msra.mxu0 %v2426_v12  ;;  %v867_v12 = vld [vmem:[#allocation2 + $0x1a0] sm:$0xff] }
 0x31d   :  { %2431 = vmatprep.subr.bf16.mxu0 %v2430_v15 }
 0x320   :  { %2433 = vmatpush3.bf16.msra.mxu0 %v2430_v15  ;;  %v1694_v15 = vld [vmem:[%s3054_s2 + $0x80] sm:$0xff] }
 0x3d6   :  { %v2059_v18 = vpop.f32.mrb[6].mxu0 }
 0x3d7   :  { %v568_v20 = vmul.f32 %v2059_v18, %v562_v16  ;;  %v531_v21 = vpop.f32.mrb[7].mxu0  ;;  %v2454_v16 = vpack.c.bf16 %v868_v13, %v867_v12  ;;  %v869_v18 = vld [vmem:[#allocation2 + $0x1b0] sm:$0xff] }
 0x3d8   :  { %v567_v23 = vmul.f32 %v561_v17, %v531_v21  ;;  %v1695_v17 = vld [vmem:[%s3054_s2 + $0x88] sm:$0xff]  ;;  %v871_v21 = vld [vmem:[#allocation2 + $0x1c0] sm:$0xff] }
 0x3d9   :  { %v581_v25 = vadd.f32 %v575_v19, %v568_v20  ;;  %v870_v19 = vld [vmem:[#allocation2 + $0x1b8] sm:$0xff] }
 0x3da   :  { %v580_v27 = vadd.f32 %v574_v22, %v567_v23  ;;  %v2062_v28 = vpop.f32.mrb[8].mxu0  ;;  %v2458_v20 = vpack.c.bf16 %v870_v19, %v869_v18  ;;  %v872_v22 = vld [vmem:[#allocation2 + $0x1c8] sm:$0xff] }
 0x3db   :  { %v570_v30 = vmul.f32 %v2062_v28, %v564_v24  ;;  %v541_v31 = vpop.f32.mrb[9].mxu0  ;;  %v2462_v23 = vpack.c.bf16 %v872_v22, %v871_v21  ;;  %v873_v24 = vld [vmem:[#allocation2 + $0x1d0] sm:$0xff]  ;;  %v876_v28 = vld [vmem:[#allocation2 + $0x1e8] sm:$0xff] }
 0x3dc   :  { %2595 = vtanh.f32 %v580_v27  ;;  %v569_v33 = vmul.f32 %v563_v26, %v541_v31  ;;  %v875_v27 = vld [vmem:[#allocation2 + $0x1e0] sm:$0xff]  ;;  %v878_v31 = vld [vmem:[#allocation2 + $0x1f8] sm:$0xff]  ;;  %v1128_v19 = vld [vmem:[#allocation2 + $0x208] sm:$0xff] }
 0x3dd   :  { %2597 = vtanh.f32 %v581_v25  ;;  %v583_v41 = vadd.f32 %v577_v29, %v570_v30  ;;  %v874_v25 = vld [vmem:[#allocation2 + $0x1d8] sm:$0xff]  ;;  %v2470_v29 = vpack.c.bf16 %v876_v28, %v875_v27  ;;  %v877_v30 = vld [vmem:[#allocation2 + $0x1f0] sm:$0xff]  ;;  %v1704_v27 = vld [vmem:[%s3054_s2 + $0xa0] sm:$0xff] }
 0x3de   :  { %v582_v43 = vadd.f32 %v576_v32, %v569_v33  ;;  %v2065_v44 = vpop.f32.mrb[10].mxu0  ;;  %v2466_v26 = vpack.c.bf16 %v874_v25, %v873_v24  ;;  %v2474_v32 = vpack.c.bf16 %v878_v31, %v877_v30  ;;  %v826_v33 = vld [vmem:[#allocation4 + $0x68] sm:$0xff]  ;;  %v1129_v24 = vld [vmem:[#allocation2 + $0x210] sm:$0xff]  ;;  %v1130_v25 = vld [vmem:[#allocation2 + $0x218] sm:$0xff] }
 0x3df   :  { %v572_v46 = vmul.f32 %v2065_v44, %v566_v34  ;;  %v551_v47 = vpop.f32.mrb[11].mxu0  ;;  %v825_v34 = vld [vmem:[#allocation4 + $0x60] sm:$0xff]  ;;  %v2494_v28 = vpack.c.bf16 %v1130_v25, %v1129_v24  ;;  %v1132_v30 = vld [vmem:[#allocation2 + $0x228] sm:$0xff] }
 0x3e0   :  { %2599 = vtanh.f32 %v582_v43  ;;  %v571_v49 = vmul.f32 %v565_v42, %v551_v47  ;;  %v839_v42 = vld [vmem:[#allocation6 + $0x68] sm:$0xff]  ;;  %v828_v47 = vld [vmem:[#allocation4 + $0x78] sm:$0xff] }
 0x3e1   :  { %2601 = vtanh.f32 %v583_v41  ;;  %v585_v50 = vadd.f32 %v579_v45, %v572_v46  ;;  %v838_v45 = vld [vmem:[#allocation6 + $0x60] sm:$0xff]  ;;  %v1705_v31 = vld [vmem:[%s3054_s2 + $0xa8] sm:$0xff] }
 0x3e2   :  { %v584_v51 = vadd.f32 %v578_v48, %v571_v49  ;;  %v827_v49 = vld [vmem:[#allocation4 + $0x70] sm:$0xff] }
 0x3e4   :  { %2603 = vtanh.f32 %v584_v51 }
 0x3e5   :  { %2605 = vtanh.f32 %v585_v50 }
 0x3e6   :  { %v2596_v52 = vpop.eup %2595 }
 0x3e7   :  { %v2598_v53 = vpop.eup %2597  ;;  %2098 = vmatprep.mubr.f32.mxu0 %v2596_v52  ;;  %v841_v52 = vld [vmem:[#allocation6 + $0x78] sm:$0xff] }
 0x3e8   :  { %2099 = vmatmul.mubr.f32.vlgmr.msra.gmra.mrb[12].mxu0 %v2598_v53 }
 0x3ea   :  { %v2600_v54 = vpop.eup %2599 }
 0x3eb   :  { %v2602_v55 = vpop.eup %2601  ;;  %2101 = vmatprep.mubr.f32.mxu0 %v2600_v54 }
 0x3ec   :  { %2102 = vmatmul.mubr.f32.gmra.mrb[14].mxu0 %v2602_v55  ;;  %v840_v55 = vld [vmem:[#allocation6 + $0x70] sm:$0xff] }
 0x3ee   :  { %v2604_v56 = vpop.eup %2603 }
 0x3ef   :  { %v2606_v57 = vpop.eup %2605  ;;  %2104 = vmatprep.mubr.f32.mxu0 %v2604_v56 }
 0x3f0   :  { %2105 = vmatmul.mubr.f32.gmra.mrb[16].mxu0 %v2606_v57  ;;  %v830_v57 = vld [vmem:[#allocation4 + $0x88] sm:$0xff] }
 0x4bb   :  { %v2100_v59 = vpop.f32.mrb[12].mxu0 }
 0x4bc   :  { %v675_v60 = vpop.f32.mrb[13].mxu0 }
 0x4bd   :  { %v2434_v61 = vpack.c.bf16 %v2100_v59, %v675_v60  ;;  %v829_v59 = vld [vmem:[#allocation4 + $0x80] sm:$0xff] }
 0x4bf   :  { %v2103_v62 = vpop.f32.mrb[14].mxu0  ;;  %2435 = vmatprep.subr.bf16.mxu1 %v2434_v61 }
 0x4c0   :  { %v685_v63 = vpop.f32.mrb[15].mxu0  ;;  %2437 = vmatpush3.bf16.msra.mxu1 %v2434_v61 }
 0x4c1   :  { %v2438_v0 = vpack.c.bf16 %v2103_v62, %v685_v63  ;;  %v843_v62 = vld [vmem:[#allocation6 + $0x88] sm:$0xff] }
 0x4c3   :  { %v2106_v3 = vpop.f32.mrb[16].mxu0  ;;  %2439 = vmatprep.subr.bf16.mxu1 %v2438_v0 }
 0x4c4   :  { %v695_v4 = vpop.f32.mrb[17].mxu0  ;;  %2441 = vmatpush3.bf16.msra.mxu1 %v2438_v0 }
 0x4c5   :  { %v2442_v5 = vpack.c.bf16 %v2106_v3, %v695_v4 }
 0x4c7   :  { %2443 = vmatprep.subr.bf16.mxu1 %v2442_v5 }
 0x4c8   :  { %2445 = vmatpush3.bf16.msra.mxu1 %v2442_v5 }
 0x4c9   :  { %2447 = vmatprep.subr.bf16.mxu1 %v2446_v6 }
 0x4cb   :  { %2120 = vmatmul.mubr.msk.f32.vlgmr.msra.gmra.mrb[12].mxu1 %vm184_vm0, %v1691_v9 }
 0x4cc   :  { %2122 = vmatprep.mubr.msk.f32.mxu1 %vm184_vm0, %v1692_v10  ;;  %2449 = vmatpush3.bf16.msra.mxu1 %v2446_v6 }
 0x4cd   :  { %2451 = vmatprep.subr.bf16.mxu1 %v2450_v11 }
 0x4cf   :  { %2123 = vmatmul.mubr.msk.f32.gmra.mrb[14].mxu1 %vm184_vm0, %v1693_v14 }
 0x4d0   :  { %2125 = vmatprep.mubr.msk.f32.mxu1 %vm184_vm0, %v1694_v15  ;;  %2453 = vmatpush3.bf16.msra.mxu1 %v2450_v11 }
 0x4d1   :  { %2455 = vmatprep.subr.bf16.mxu1 %v2454_v16 }
 0x4d3   :  { %2126 = vmatmul.mubr.msk.f32.gmra.mrb[16].mxu1 %vm184_vm0, %v1695_v17 }
 0x4d4   :  { %2457 = vmatpush3.bf16.msra.mxu1 %v2454_v16 }
 0x4d5   :  { %2459 = vmatprep.subr.bf16.mxu1 %v2458_v20 }
 0x4d8   :  { %2461 = vmatpush3.bf16.msra.mxu1 %v2458_v20 }
 0x4d9   :  { %2463 = vmatprep.subr.bf16.mxu1 %v2462_v23 }
 0x4dc   :  { %2465 = vmatpush3.bf16.msra.mxu1 %v2462_v23 }
 0x4dd   :  { %2467 = vmatprep.subr.bf16.mxu1 %v2466_v26 }
 0x4e0   :  { %2469 = vmatpush3.bf16.msra.mxu1 %v2466_v26  ;;  %v1703_v26 = vld [vmem:[%s3054_s2 + $0x98] sm:$0xff] }
 0x4e1   :  { %2471 = vmatprep.subr.bf16.mxu1 %v2470_v29 }
 0x4e4   :  { %2473 = vmatpush3.bf16.msra.mxu1 %v2470_v29  ;;  %v1131_v29 = vld [vmem:[#allocation2 + $0x220] sm:$0xff] }
 0x4e5   :  { %2475 = vmatprep.subr.bf16.mxu1 %v2474_v32 }
 0x4e8   :  { %2477 = vmatpush3.bf16.msra.mxu1 %v2474_v32  ;;  %v1706_v32 = vld [vmem:[%s3054_s2 + $0xb0] sm:$0xff] }
 0x59e   :  { %v2121_v41 = vpop.f32.mrb[12].mxu1 }
 0x59f   :  { %v832_v43 = vmul.f32 %v2121_v41, %v826_v33  ;;  %v795_v44 = vpop.f32.mrb[13].mxu1  ;;  %v2498_v33 = vpack.c.bf16 %v1132_v30, %v1131_v29  ;;  %v1134_v41 = vld [vmem:[#allocation2 + $0x238] sm:$0xff] }
 0x5a0   :  { %v831_v46 = vmul.f32 %v825_v34, %v795_v44  ;;  %v1133_v34 = vld [vmem:[#allocation2 + $0x230] sm:$0xff]  ;;  %v1135_v44 = vld [vmem:[#allocation2 + $0x240] sm:$0xff] }
 0x5a1   :  { %v845_v48 = vadd.f32 %v839_v42, %v832_v43  ;;  %v1707_v42 = vld [vmem:[%s3054_s2 + $0xb8] sm:$0xff]  ;;  %v2502_v43 = vpack.c.bf16 %v1134_v41, %v1133_v34  ;;  %v1397_v41 = vld [vmem:[#allocation2 + $0x280] sm:$0xff] }
 0x5a2   :  { %v844_v50 = vadd.f32 %v838_v45, %v831_v46  ;;  %v2124_v51 = vpop.f32.mrb[14].mxu1  ;;  %v1136_v45 = vld [vmem:[#allocation2 + $0x248] sm:$0xff] }
 0x5a3   :  { %2607 = vtanh.f32 %v845_v48  ;;  %v834_v53 = vmul.f32 %v2124_v51, %v828_v47  ;;  %v805_v54 = vpop.f32.mrb[15].mxu1  ;;  %v2506_v46 = vpack.c.bf16 %v1136_v45, %v1135_v44  ;;  %v1137_v47 = vld [vmem:[#allocation2 + $0x250] sm:$0xff]  ;;  %v1138_v48 = vld [vmem:[#allocation2 + $0x258] sm:$0xff]  ;;  %v1140_v51 = vld [vmem:[#allocation2 + $0x268] sm:$0xff] }
 0x5a4   :  { %2609 = vtanh.f32 %v844_v50  ;;  %v833_v56 = vmul.f32 %v827_v49, %v805_v54  ;;  %v2510_v49 = vpack.c.bf16 %v1138_v48, %v1137_v47  ;;  %v1139_v50 = vld [vmem:[#allocation2 + $0x260] sm:$0xff]  ;;  %v1142_v54 = vld [vmem:[#allocation2 + $0x278] sm:$0xff]  ;;  %v1399_v47 = vld [vmem:[#allocation2 + $0x290] sm:$0xff] }
 0x5a5   :  { %v847_v58 = vadd.f32 %v841_v52, %v834_v53  ;;  %v2514_v52 = vpack.c.bf16 %v1140_v51, %v1139_v50  ;;  %v1141_v53 = vld [vmem:[#allocation2 + $0x270] sm:$0xff]  ;;  %v1400_v48 = vld [vmem:[#allocation2 + $0x298] sm:$0xff] }
 0x5a6   :  { %v846_v60 = vadd.f32 %v840_v55, %v833_v56  ;;  %v2127_v61 = vpop.f32.mrb[16].mxu1  ;;  %v2518_v55 = vpack.c.bf16 %v1142_v54, %v1141_v53  ;;  %v1096_v56 = vld [vmem:[#allocation4 + $0x98] sm:$0xff]  ;;  %v1716_v50 = vld [vmem:[%s3054_s2 + $0xd0] sm:$0xff]  ;;  %v2538_v51 = vpack.c.bf16 %v1400_v48, %v1399_v47  ;;  %v1402_v53 = vld [vmem:[#allocation2 + $0x2a8] sm:$0xff] }
 0x5a7   :  { %2611 = vtanh.f32 %v847_v58  ;;  %v836_v63 = vmul.f32 %v2127_v61, %v830_v57  ;;  %v815_v0 = vpop.f32.mrb[17].mxu1  ;;  %v1095_v57 = vld [vmem:[#allocation4 + $0x90] sm:$0xff]  ;;  %v1717_v54 = vld [vmem:[%s3054_s2 + $0xd8] sm:$0xff] }
 0x5a8   :  { %2613 = vtanh.f32 %v846_v60  ;;  %v835_v2 = vmul.f32 %v829_v59, %v815_v0  ;;  %v1109_v59 = vld [vmem:[#allocation6 + $0x98] sm:$0xff]  ;;  %v1098_v0 = vld [vmem:[#allocation4 + $0xa8] sm:$0xff] }
 0x5a9   :  { %v849_v3 = vadd.f32 %v843_v62, %v836_v63  ;;  %v1108_v62 = vld [vmem:[#allocation6 + $0x90] sm:$0xff] }
 0x5aa   :  { %v848_v4 = vadd.f32 %v842_v1, %v835_v2  ;;  %v1097_v2 = vld [vmem:[#allocation4 + $0xa0] sm:$0xff] }
 0x5ab   :  { %2615 = vtanh.f32 %v849_v3 }
 0x5ac   :  { %2617 = vtanh.f32 %v848_v4 }
 0x5ad   :  { %v2608_v5 = vpop.eup %2607 }
 0x5ae   :  { %v2610_v6 = vpop.eup %2609  ;;  %v2918_v8 = vadd.f32 %v2608_v5, %v2850_v36  ;;  %v1111_v5 = vld [vmem:[#allocation6 + $0xa8] sm:$0xff] }
 0x5af   :  { %v2915_v7 = vadd.f32 %v2610_v6, %v2848_v35 }
 0x5b1   :  { %v2612_v9 = vpop.eup %2611  ;;  %2160 = vmatprep.mubr.f32.mxu1 %v2915_v7 }
 0x5b2   :  { %v2614_v10 = vpop.eup %2613  ;;  %2161 = vmatmul.mubr.f32.vlgmr.msra.gmra.mrb[18].mxu1 %v2918_v8  ;;  %v2926_v12 = vadd.f32 %v2612_v9, %v2856_v38 }
 0x5b3   :  { %v2923_v11 = vadd.f32 %v2614_v10, %v2854_v37  ;;  %v1702_v37 = vld [vmem:[%s3054_s2 + $0x90] sm:$0xff]  ;;  %v1110_v10 = vld [vmem:[#allocation6 + $0xa0] sm:$0xff] }
 0x5b4   :  { %2181 = vmatprep.mubr.msk.f32.mxu0 %vm184_vm0, %v1702_v37 }
 0x5b5   :  { %v2616_v13 = vpop.eup %2615  ;;  %2163 = vmatprep.mubr.f32.mxu1 %v2923_v11 }
 0x5b6   :  { %v2618_v35 = vpop.eup %2617  ;;  %2164 = vmatmul.mubr.f32.gmra.mrb[20].mxu1 %v2926_v12  ;;  %v2934_v14 = vadd.f32 %v2616_v13, %v2862_v40  ;;  %v1127_v40 = vld [vmem:[#allocation2 + $0x200] sm:$0xff] }
 0x5b7   :  { %v2931_v36 = vadd.f32 %v2618_v35, %v2860_v39  ;;  %v2490_v23 = vpack.c.bf16 %v1128_v19, %v1127_v40  ;;  %v1100_v35 = vld [vmem:[#allocation4 + $0xb8] sm:$0xff]  ;;  %v1112_v40 = vld [vmem:[#allocation6 + $0xb0] sm:$0xff] }
 0x5b9   :  { %2166 = vmatprep.mubr.f32.mxu1 %v2931_v36 }
 0x5ba   :  { %2167 = vmatmul.mubr.f32.gmra.mrb[22].mxu1 %v2934_v14 }
 0x685   :  { %v2162_v38 = vpop.f32.mrb[18].mxu1 }
 0x686   :  { %v945_v15 = vpop.f32.mrb[19].mxu1 }
 0x687   :  { %v2478_v16 = vpack.c.bf16 %v2162_v38, %v945_v15  ;;  %v1099_v38 = vld [vmem:[#allocation4 + $0xb0] sm:$0xff] }
 0x689   :  { %v2165_v17 = vpop.f32.mrb[20].mxu1  ;;  %2479 = vmatprep.subr.bf16.mxu0 %v2478_v16 }
 0x68a   :  { %v955_v39 = vpop.f32.mrb[21].mxu1  ;;  %2481 = vmatpush3.bf16.msra.mxu0 %v2478_v16 }
 0x68b   :  { %v2482_v18 = vpack.c.bf16 %v2165_v17, %v955_v39  ;;  %v1113_v17 = vld [vmem:[#allocation6 + $0xb8] sm:$0xff] }
 0x68d   :  { %v2168_v20 = vpop.f32.mrb[22].mxu1  ;;  %2483 = vmatprep.subr.bf16.mxu0 %v2482_v18 }
 0x68e   :  { %v965_v21 = vpop.f32.mrb[23].mxu1  ;;  %2485 = vmatpush3.bf16.msra.mxu0 %v2482_v18 }
 0x68f   :  { %v2486_v22 = vpack.c.bf16 %v2168_v20, %v965_v21 }
 0x691   :  { %2487 = vmatprep.subr.bf16.mxu0 %v2486_v22 }
 0x692   :  { %2489 = vmatpush3.bf16.msra.mxu0 %v2486_v22 }
 0x693   :  { %2491 = vmatprep.subr.bf16.mxu0 %v2490_v23 }
 0x695   :  { %2182 = vmatmul.mubr.msk.f32.vlgmr.msra.gmra.mrb[18].mxu0 %vm184_vm0, %v1703_v26 }
 0x696   :  { %2184 = vmatprep.mubr.msk.f32.mxu0 %vm184_vm0, %v1704_v27  ;;  %2493 = vmatpush3.bf16.msra.mxu0 %v2490_v23 }
 0x697   :  { %2495 = vmatprep.subr.bf16.mxu0 %v2494_v28 }
 0x699   :  { %2185 = vmatmul.mubr.msk.f32.gmra.mrb[20].mxu0 %vm184_vm0, %v1705_v31 }
 0x69a   :  { %2187 = vmatprep.mubr.msk.f32.mxu0 %vm184_vm0, %v1706_v32  ;;  %2497 = vmatpush3.bf16.msra.mxu0 %v2494_v28  ;;  %v1714_v28 = vld [vmem:[%s3054_s2 + $0xc0] sm:$0xff] }
 0x69b   :  { %2499 = vmatprep.subr.bf16.mxu0 %v2498_v33  ;;  %2243 = vmatprep.mubr.msk.f32.mxu1 %vm184_vm0, %v1714_v28 }
 0x69d   :  { %2188 = vmatmul.mubr.msk.f32.gmra.mrb[22].mxu0 %vm184_vm0, %v1707_v42  ;;  %v1398_v42 = vld [vmem:[#allocation2 + $0x288] sm:$0xff] }
 0x69e   :  { %2501 = vmatpush3.bf16.msra.mxu0 %v2498_v33 }
 0x69f   :  { %2503 = vmatprep.subr.bf16.mxu0 %v2502_v43 }
 0x6a2   :  { %2505 = vmatpush3.bf16.msra.mxu0 %v2502_v43 }
 0x6a3   :  { %2507 = vmatprep.subr.bf16.mxu0 %v2506_v46 }
 0x6a6   :  { %2509 = vmatpush3.bf16.msra.mxu0 %v2506_v46  ;;  %v2534_v46 = vpack.c.bf16 %v1398_v42, %v1397_v41  ;;  %v1376_v41 = vld [vmem:[#allocation6 + $0xe0] sm:$0xff] }
 0x6a7   :  { %2511 = vmatprep.subr.bf16.mxu0 %v2510_v49 }
 0x6aa   :  { %2513 = vmatpush3.bf16.msra.mxu0 %v2510_v49  ;;  %v1715_v49 = vld [vmem:[%s3054_s2 + $0xc8] sm:$0xff] }
 0x6ab   :  { %2515 = vmatprep.subr.bf16.mxu0 %v2514_v52 }
 0x6ae   :  { %2517 = vmatpush3.bf16.msra.mxu0 %v2514_v52  ;;  %v1401_v52 = vld [vmem:[#allocation2 + $0x2a0] sm:$0xff] }
 0x6af   :  { %2519 = vmatprep.subr.bf16.mxu0 %v2518_v55 }
 0x6b2   :  { %2521 = vmatpush3.bf16.msra.mxu0 %v2518_v55  ;;  %v1718_v55 = vld [vmem:[%s3054_s2 + $0xe0] sm:$0xff] }
 0x768   :  { %v2183_v58 = vpop.f32.mrb[18].mxu0 }
 0x769   :  { %v1102_v60 = vmul.f32 %v2183_v58, %v1096_v56  ;;  %v1065_v61 = vpop.f32.mrb[19].mxu0  ;;  %v2542_v56 = vpack.c.bf16 %v1402_v53, %v1401_v52  ;;  %v1403_v58 = vld [vmem:[#allocation2 + $0x2b0] sm:$0xff] }
 0x76a   :  { %v1101_v63 = vmul.f32 %v1095_v57, %v1065_v61  ;;  %v1719_v57 = vld [vmem:[%s3054_s2 + $0xe8] sm:$0xff]  ;;  %v1405_v61 = vld [vmem:[#allocation2 + $0x2c0] sm:$0xff] }
 0x76b   :  { %v1115_v1 = vadd.f32 %v1109_v59, %v1102_v60  ;;  %v1404_v59 = vld [vmem:[#allocation2 + $0x2b8] sm:$0xff] }
 0x76c   :  { %v1114_v3 = vadd.f32 %v1108_v62, %v1101_v63  ;;  %v2186_v4 = vpop.f32.mrb[20].mxu0  ;;  %v2546_v60 = vpack.c.bf16 %v1404_v59, %v1403_v58  ;;  %v1406_v62 = vld [vmem:[#allocation2 + $0x2c8] sm:$0xff] }
 0x76d   :  { %v1104_v6 = vmul.f32 %v2186_v4, %v1098_v0  ;;  %v1075_v9 = vpop.f32.mrb[21].mxu0  ;;  %v2550_v63 = vpack.c.bf16 %v1406_v62, %v1405_v61  ;;  %v1407_v0 = vld [vmem:[#allocation2 + $0x2d0] sm:$0xff]  ;;  %v1410_v4 = vld [vmem:[#allocation2 + $0x2e8] sm:$0xff]  ;;  %v1727_v61 = vld [vmem:[%s3054_s2 + $0xf8] sm:$0xff] }
 0x76e   :  { %2619 = vtanh.f32 %v1114_v3  ;;  %v1103_v13 = vmul.f32 %v1097_v2, %v1075_v9  ;;  %v1409_v3 = vld [vmem:[#allocation2 + $0x2e0] sm:$0xff]  ;;  %v1412_v9 = vld [vmem:[#allocation2 + $0x2f8] sm:$0xff] }
 0x76f   :  { %2621 = vtanh.f32 %v1115_v1  ;;  %v1117_v37 = vadd.f32 %v1111_v5, %v1104_v6  ;;  %v1408_v1 = vld [vmem:[#allocation2 + $0x2d8] sm:$0xff]  ;;  %v2558_v5 = vpack.c.bf16 %v1410_v4, %v1409_v3  ;;  %v1411_v6 = vld [vmem:[#allocation2 + $0x2f0] sm:$0xff]  ;;  %v1728_v62 = vld [vmem:[%s3054_s2 + $0x100] sm:$0xff] }
 0x770   :  { %v1116_v15 = vadd.f32 %v1110_v10, %v1103_v13  ;;  %v2189_v16 = vpop.f32.mrb[22].mxu0  ;;  %v2554_v2 = vpack.c.bf16 %v1408_v1, %v1407_v0  ;;  %v2562_v10 = vpack.c.bf16 %v1412_v9, %v1411_v6  ;;  %v1360_v13 = vld [vmem:[#allocation4 + $0xc8] sm:$0xff]  ;;  %v1730_v0 = vld [vmem:[%s3054_s2 + $0x110] sm:$0xff]  ;;  %v1731_v1 = vld [vmem:[%s3054_s2 + $0x118] sm:$0xff] }
 0x771   :  { %v1106_v39 = vmul.f32 %v2189_v16, %v1100_v35  ;;  %v1085_v18 = vpop.f32.mrb[23].mxu0  ;;  %v1359_v35 = vld [vmem:[#allocation4 + $0xc0] sm:$0xff]  ;;  %v1629_v3 = vld [vmem:[#allocation4 + $0xf0] sm:$0xff] }
 0x772   :  { %2623 = vtanh.f32 %v1116_v15  ;;  %v1105_v19 = vmul.f32 %v1099_v38, %v1085_v18  ;;  %v1373_v38 = vld [vmem:[#allocation6 + $0xc8] sm:$0xff]  ;;  %v1362_v18 = vld [vmem:[#allocation4 + $0xd8] sm:$0xff] }
 0x773   :  { %2625 = vtanh.f32 %v1117_v37  ;;  %v1119_v20 = vadd.f32 %v1113_v17, %v1106_v39  ;;  %v1372_v17 = vld [vmem:[#allocation6 + $0xc0] sm:$0xff] }
 0x774   :  { %v1118_v21 = vadd.f32 %v1112_v40, %v1105_v19  ;;  %v1361_v19 = vld [vmem:[#allocation4 + $0xd0] sm:$0xff] }
 0x776   :  { %2627 = vtanh.f32 %v1118_v21 }
 0x777   :  { %2629 = vtanh.f32 %v1119_v20 }
 0x778   :  { %v2620_v22 = vpop.eup %2619 }
 0x779   :  { %v2622_v23 = vpop.eup %2621  ;;  %2222 = vmatprep.mubr.f32.mxu0 %v2620_v22  ;;  %v1375_v22 = vld [vmem:[#allocation6 + $0xd8] sm:$0xff] }
 0x77a   :  { %2223 = vmatmul.mubr.f32.vlgmr.msra.gmra.mrb[24].mxu0 %v2622_v23 }
 0x77c   :  { %v2624_v24 = vpop.eup %2623 }
 0x77d   :  { %v2626_v25 = vpop.eup %2625  ;;  %2225 = vmatprep.mubr.f32.mxu0 %v2624_v24 }
 0x77e   :  { %2226 = vmatmul.mubr.f32.gmra.mrb[26].mxu0 %v2626_v25  ;;  %v1374_v25 = vld [vmem:[#allocation6 + $0xd0] sm:$0xff] }
 0x780   :  { %v2628_v26 = vpop.eup %2627 }
 0x781   :  { %v2630_v27 = vpop.eup %2629  ;;  %2228 = vmatprep.mubr.f32.mxu0 %v2628_v26 }
 0x782   :  { %2229 = vmatmul.mubr.f32.gmra.mrb[28].mxu0 %v2630_v27  ;;  %v1364_v27 = vld [vmem:[#allocation4 + $0xe8] sm:$0xff] }
 0x84d   :  { %v2224_v29 = vpop.f32.mrb[24].mxu0 }
 0x84e   :  { %v1209_v30 = vpop.f32.mrb[25].mxu0 }
 0x84f   :  { %v2522_v31 = vpack.c.bf16 %v2224_v29, %v1209_v30  ;;  %v1363_v29 = vld [vmem:[#allocation4 + $0xe0] sm:$0xff] }
 0x851   :  { %v2227_v32 = vpop.f32.mrb[26].mxu0  ;;  %2523 = vmatprep.subr.bf16.mxu1 %v2522_v31 }
 0x852   :  { %v1219_v33 = vpop.f32.mrb[27].mxu0  ;;  %2525 = vmatpush3.bf16.msra.mxu1 %v2522_v31 }
 0x853   :  { %v2526_v34 = vpack.c.bf16 %v2227_v32, %v1219_v33  ;;  %v1377_v32 = vld [vmem:[#allocation6 + $0xe8] sm:$0xff] }
 0x855   :  { %v2230_v43 = vpop.f32.mrb[28].mxu0  ;;  %2527 = vmatprep.subr.bf16.mxu1 %v2526_v34 }
 0x856   :  { %v1229_v44 = vpop.f32.mrb[29].mxu0  ;;  %2529 = vmatpush3.bf16.msra.mxu1 %v2526_v34 }
 0x857   :  { %v2530_v45 = vpack.c.bf16 %v2230_v43, %v1229_v44 }
 0x859   :  { %2531 = vmatprep.subr.bf16.mxu1 %v2530_v45 }
 0x85a   :  { %2533 = vmatpush3.bf16.msra.mxu1 %v2530_v45 }
 0x85b   :  { %2535 = vmatprep.subr.bf16.mxu1 %v2534_v46 }
 0x85d   :  { %2244 = vmatmul.mubr.msk.f32.vlgmr.msra.gmra.mrb[24].mxu1 %vm184_vm0, %v1715_v49 }
 0x85e   :  { %2246 = vmatprep.mubr.msk.f32.mxu1 %vm184_vm0, %v1716_v50  ;;  %2537 = vmatpush3.bf16.msra.mxu1 %v2534_v46 }
 0x85f   :  { %2539 = vmatprep.subr.bf16.mxu1 %v2538_v51 }
 0x861   :  { %2247 = vmatmul.mubr.msk.f32.gmra.mrb[26].mxu1 %vm184_vm0, %v1717_v54 }
 0x862   :  { %2249 = vmatprep.mubr.msk.f32.mxu1 %vm184_vm0, %v1718_v55  ;;  %2541 = vmatpush3.bf16.msra.mxu1 %v2538_v51 }
 0x863   :  { %2543 = vmatprep.subr.bf16.mxu1 %v2542_v56 }
 0x865   :  { %2250 = vmatmul.mubr.msk.f32.gmra.mrb[28].mxu1 %vm184_vm0, %v1719_v57 }
 0x866   :  { %2545 = vmatpush3.bf16.msra.mxu1 %v2542_v56 }
 0x867   :  { %2547 = vmatprep.subr.bf16.mxu1 %v2546_v60 }
 0x86a   :  { %2549 = vmatpush3.bf16.msra.mxu1 %v2546_v60 }
 0x86b   :  { %2551 = vmatprep.subr.bf16.mxu1 %v2550_v63 }
 0x86e   :  { %2553 = vmatpush3.bf16.msra.mxu1 %v2550_v63  ;;  %v1729_v63 = vld [vmem:[%s3054_s2 + $0x108] sm:$0xff] }
 0x86f   :  { %2555 = vmatprep.subr.bf16.mxu1 %v2554_v2 }
 0x872   :  { %2557 = vmatpush3.bf16.msra.mxu1 %v2554_v2  ;;  %v1630_v2 = vld [vmem:[#allocation4 + $0xf8] sm:$0xff] }
 0x873   :  { %2559 = vmatprep.subr.bf16.mxu1 %v2558_v5 }
 0x876   :  { %2561 = vmatpush3.bf16.msra.mxu1 %v2558_v5  ;;  %v1643_v5 = vld [vmem:[#allocation6 + $0xf8] sm:$0xff] }
 0x877   :  { %2563 = vmatprep.subr.bf16.mxu1 %v2562_v10 }
 0x87a   :  { %2565 = vmatpush3.bf16.msra.mxu1 %v2562_v10  ;;  %v1642_v10 = vld [vmem:[#allocation6 + $0xf0] sm:$0xff] }
 0x930   :  { %v2245_v37 = vpop.f32.mrb[24].mxu1 }
 0x931   :  { %v1366_v15 = vmul.f32 %v2245_v37, %v1360_v13  ;;  %v1329_v16 = vpop.f32.mrb[25].mxu1 }
 0x932   :  { %v1365_v39 = vmul.f32 %v1359_v35, %v1329_v16  ;;  %v1632_v35 = vld [vmem:[#allocation4 + $0x108] sm:$0xff] }
 0x933   :  { %v1379_v40 = vadd.f32 %v1373_v38, %v1366_v15  ;;  %v1631_v38 = vld [vmem:[#allocation4 + $0x100] sm:$0xff] }
 0x934   :  { %v1378_v20 = vadd.f32 %v1372_v17, %v1365_v39  ;;  %v2248_v21 = vpop.f32.mrb[26].mxu1  ;;  %v1645_v17 = vld [vmem:[#allocation6 + $0x108] sm:$0xff] }
 0x935   :  { %2631 = vtanh.f32 %v1379_v40  ;;  %v1368_v23 = vmul.f32 %v2248_v21, %v1362_v18  ;;  %v1339_v24 = vpop.f32.mrb[27].mxu1  ;;  %v2643_v39 = vld [vmem:[%s3052_s0 + $0x8] sm:$0xff]  ;;  %v2644_v21 = vld [vmem:[%s3052_s0] sm:$0xff] }
 0x936   :  { %2633 = vtanh.f32 %v1378_v20  ;;  %v1367_v26 = vmul.f32 %v1361_v19, %v1339_v24  ;;  %v1644_v20 = vld [vmem:[#allocation6 + $0x100] sm:$0xff]  ;;  %v1634_v24 = vld [vmem:[#allocation4 + $0x118] sm:$0xff] }
 0x937   :  { %v1381_v28 = vadd.f32 %v1375_v22, %v1368_v23 }
 0x938   :  { %v1380_v30 = vadd.f32 %v1374_v25, %v1367_v26  ;;  %v2251_v31 = vpop.f32.mrb[28].mxu1  ;;  %v1633_v26 = vld [vmem:[#allocation4 + $0x110] sm:$0xff] }
 0x939   :  { %2635 = vtanh.f32 %v1381_v28  ;;  %v1370_v33 = vmul.f32 %v2251_v31, %v1364_v27  ;;  %v1349_v34 = vpop.f32.mrb[29].mxu1 }
 0x93a   :  { %2637 = vtanh.f32 %v1380_v30  ;;  %v1369_v42 = vmul.f32 %v1363_v29, %v1349_v34  ;;  %v1647_v29 = vld [vmem:[#allocation6 + $0x118] sm:$0xff]  ;;  %v1646_v34 = vld [vmem:[#allocation6 + $0x110] sm:$0xff] }
 0x93b   :  { %v1383_v43 = vadd.f32 %v1377_v32, %v1370_v33  ;;  %v2645_v30 = vld [vmem:[%s3052_s0 + $0x18] sm:$0xff] }
 0x93c   :  { %v1382_v44 = vadd.f32 %v1376_v41, %v1369_v42  ;;  %v2646_v41 = vld [vmem:[%s3052_s0 + $0x10] sm:$0xff] }
 0x93d   :  { %2639 = vtanh.f32 %v1383_v43 }
 0x93e   :  { %2641 = vtanh.f32 %v1382_v44 }
 0x93f   :  { %v2632_v45 = vpop.eup %2631 }
 0x940   :  { %v2634_v46 = vpop.eup %2633  ;;  %v1391_v48 = vadd.f32 %v2632_v45, %v2918_v8 }
 0x941   :  { %v1390_v47 = vadd.f32 %v2634_v46, %v2915_v7  ;;  %v1726_v7 = vld [vmem:[%s3054_s2 + $0xf0] sm:$0xff]  ;;  %v2647_v46 = vld [vmem:[%s3052_s0 + $0x28] sm:$0xff] }
 0x942   :  { %2305 = vmatprep.mubr.msk.f32.mxu0 %vm184_vm0, %v1726_v7 }
 0x943   :  { %v2636_v49 = vpop.eup %2635  ;;  %2284 = vmatprep.mubr.f32.mxu1 %v1390_v47 }
 0x944   :  { %v2638_v50 = vpop.eup %2637  ;;  %2285 = vmatmul.mubr.f32.vlgmr.msra.gmra.mrb[30].mxu1 %v1391_v48  ;;  %v1393_v52 = vadd.f32 %v2636_v49, %v2926_v12  ;;  %v2648_v48 = vld [vmem:[%s3052_s0 + $0x20] sm:$0xff] }
 0x945   :  { %v1392_v51 = vadd.f32 %v2638_v50, %v2923_v11 }
 0x947   :  { %v2640_v53 = vpop.eup %2639  ;;  %2287 = vmatprep.mubr.f32.mxu1 %v1392_v51 }
 0x948   :  { %v2642_v54 = vpop.eup %2641  ;;  %2288 = vmatmul.mubr.f32.gmra.mrb[32].mxu1 %v1393_v52  ;;  %v1395_v56 = vadd.f32 %v2640_v53, %v2934_v14 }
 0x949   :  { %v1394_v55 = vadd.f32 %v2642_v54, %v2931_v36 }
 0x94b   :  { %2290 = vmatprep.mubr.f32.mxu1 %v1394_v55 }
 0x94c   :  { %2291 = vmatmul.mubr.f32.gmra.mrb[34].mxu1 %v1395_v56 }
 0xa17   :  { %v2286_v8 = vpop.f32.mrb[30].mxu1 }
 0xa18   :  { %v1479_v11 = vpop.f32.mrb[31].mxu1 }
 0xa19   :  { %v2566_v57 = vpack.c.bf16 %v2286_v8, %v1479_v11 }
 0xa1b   :  { %v2289_v12 = vpop.f32.mrb[32].mxu1  ;;  %2567 = vmatprep.subr.bf16.mxu0 %v2566_v57 }
 0xa1c   :  { %v1489_v58 = vpop.f32.mrb[33].mxu1  ;;  %2569 = vmatpush3.bf16.msra.mxu0 %v2566_v57 }
 0xa1d   :  { %v2570_v59 = vpack.c.bf16 %v2289_v12, %v1489_v58 }
 0xa1f   :  { %v2292_v60 = vpop.f32.mrb[34].mxu1  ;;  %2571 = vmatprep.subr.bf16.mxu0 %v2570_v59 }
 0xa20   :  { %v1499_v36 = vpop.f32.mrb[35].mxu1  ;;  %2573 = vmatpush3.bf16.msra.mxu0 %v2570_v59 }
 0xa21   :  { %v2574_v14 = vpack.c.bf16 %v2292_v60, %v1499_v36 }
 0xa23   :  { %2575 = vmatprep.subr.bf16.mxu0 %v2574_v14 }
 0xa24   :  { %2577 = vmatpush3.bf16.msra.mxu0 %v2574_v14 }
 0xa27   :  { %2306 = vmatmul.mubr.msk.f32.vlgmr.msra.gmra.mrb[30].mxu0 %vm184_vm0, %v1727_v61 }
 0xa28   :  { %2308 = vmatprep.mubr.msk.f32.mxu0 %vm184_vm0, %v1728_v62 }
 0xa2b   :  { %2309 = vmatmul.mubr.msk.f32.gmra.mrb[32].mxu0 %vm184_vm0, %v1729_v63 }
 0xa2c   :  { %2311 = vmatprep.mubr.msk.f32.mxu0 %vm184_vm0, %v1730_v0 }
 0xa2f   :  { %2312 = vmatmul.mubr.msk.f32.gmra.mrb[34].mxu0 %vm184_vm0, %v1731_v1 }
 0xafa   :  { %v2307_v4 = vpop.f32.mrb[30].mxu0 }
 0xafb   :  { %v1636_v6 = vmul.f32 %v2307_v4, %v1630_v2  ;;  %v1599_v9 = vpop.f32.mrb[31].mxu0 }
 0xafc   :  { %v1635_v13 = vmul.f32 %v1629_v3, %v1599_v9 }
 0xafd   :  { %v1649_v37 = vadd.f32 %v1643_v5, %v1636_v6 }
 0xafe   :  { %v1648_v15 = vadd.f32 %v1642_v10, %v1635_v13  ;;  %v2310_v16 = vpop.f32.mrb[32].mxu0 }
 0xaff   :  { %v1655_v18 = vadd.f32 %v2643_v39, %v1649_v37  ;;  %v1638_v40 = vmul.f32 %v2310_v16, %v1632_v35  ;;  %v1609_v19 = vpop.f32.mrb[33].mxu0 }
 0xb00   :  { %v1654_v22 = vadd.f32 %v2644_v21, %v1648_v15  ;;  %v1637_v23 = vmul.f32 %v1631_v38, %v1609_v19 }
 0xb01   :  { %1661 = vst [vmem:[%s3057_s5 + $0x8] sm:$0xff] %v1655_v18  ;;  %v1651_v25 = vadd.f32 %v1645_v17, %v1638_v40 }
 0xb02   :  { %1660 = vst [vmem:[%s3057_s5] sm:$0xff] %v1654_v22  ;;  %v1650_v27 = vadd.f32 %v1644_v20, %v1637_v23  ;;  %v2313_v28 = vpop.f32.mrb[34].mxu0 }
 0xb03   :  { %v1657_v31 = vadd.f32 %v2645_v30, %v1651_v25  ;;  %v1640_v32 = vmul.f32 %v2313_v28, %v1634_v24  ;;  %v1619_v33 = vpop.f32.mrb[35].mxu0 }
 0xb04   :  { %v1656_v42 = vadd.f32 %v2646_v41, %v1650_v27  ;;  %v1639_v43 = vmul.f32 %v1633_v26, %v1619_v33 }
 0xb05   :  { %1663 = vst [vmem:[%s3057_s5 + $0x18] sm:$0xff] %v1657_v31  ;;  %v1653_v44 = vadd.f32 %v1647_v29, %v1640_v32 }
 0xb06   :  { %1662 = vst [vmem:[%s3057_s5 + $0x10] sm:$0xff] %v1656_v42  ;;  %v1652_v45 = vadd.f32 %v1646_v34, %v1639_v43 }
 0xb07   :  { %v1659_v47 = vadd.f32 %v2647_v46, %v1653_v44 }
 0xb08   :  { %v1658_v49 = vadd.f32 %v2648_v48, %v1652_v45 }
 0xb09   :  { %1665 = vst [vmem:[%s3057_s5 + $0x28] sm:$0xff] %v1659_v47 }
 0xb0a   :  { %1664 = vst [vmem:[%s3057_s5 + $0x20] sm:$0xff] %v1658_v49 }
 0xb0b   :  { %1670 = vsyncpa [#allocation3], 1 }
 0xb0c   :  { %1671 = vsyncpa [#allocation5], 1 }

</bundles_post_ra>
